<compile_context>
chip_gen: v7x
topology: tpu7x:2x2x1
jax: 0.10.0
libtpu: 0.0.40
codegen_flags: <defaults>
</compile_context>

<pallas_src>
import functools
import math

import jax
import jax.numpy as jnp
from jax.experimental import pallas as pl
from jax.experimental.pallas import tpu as pltpu


def _round_up(n, m):
    return ((n + m - 1) // m) * m


def _pad_tail(a, tail):
    """Zero-pad the trailing len(tail) dims of `a` up to `tail`."""
    pads = [(0, 0)] * (a.ndim - len(tail))
    for cur, tgt in zip(a.shape[a.ndim - len(tail):], tail):
        pads.append((0, tgt - cur))
    return jnp.pad(a, pads)


def _nbytes(shape, itemsize):
    n = 1
    for d in shape:
        n *= int(d)
    return n * itemsize


# ---------------------------------------------------------------------------
# Kernel: one (batch-tile, layer) grid step
# ---------------------------------------------------------------------------
def attention_encoder_kernel(
        x_ref, bias_ref, pos_ref, wemb_ref, bemb_ref,
        wqkv_ref, bqkv_ref, wo_ref, w1_ref, bf1_ref, w2_ref, vec_ref,
        h_ref, *, dim, dim_pad):
    f32 = jnp.float32
    bf16 = jnp.bfloat16
    eps = 1e-5
    inv_dim = 1.0 / float(dim)

    # Mask selecting the real (unpadded) feature lanes for LayerNorm statistics.
    lane = jax.lax.broadcasted_iota(jnp.int32, (1, dim_pad), 1)
    ln_mask = (lane < dim).astype(f32)

    def layer_norm(t, gamma, beta):
        # Padded columns of `t` are exactly zero, so sums over dim_pad lanes
        # equal sums over the real `dim` columns (biased variance, eps=1e-5).
        mean = jnp.sum(t, axis=-1, keepdims=True) * inv_dim
        c = (t - mean) * ln_mask
        var = jnp.sum(c * c, axis=-1, keepdims=True) * inv_dim
        return c * jax.lax.rsqrt(var + eps) * gamma + beta

    def mm(a, w):
        # bf16 MXU inputs, f32 accumulation.
        return jnp.dot(a.astype(bf16), w.astype(bf16), preferred_element_type=f32)

    # ---- layer step 0: input embedding (sqrt(dim) pre-folded) + positional emb.
    @pl.when(pl.program_id(1) == 0)
    def _():
        h_ref[...] = mm(x_ref[...], wemb_ref[...]) + bemb_ref[...] + pos_ref[...]

    h = h_ref[...]                                       # (rows, dp) f32 carry
    vecs = vec_ref[...]                                  # (6, dp) f32
    bo, g1, be1, bf2, g2, be2 = [vecs[i:i + 1, :] for i in range(6)]

    # ---- single-head self attention: fused QKV (1/sqrt(d) folded into Wq/bq);
    #      samples inside the row tile are separated by the additive -1e30
    #      block-diagonal bias -> one dense MXU matmul instead of per-sample ones.
    qkv = mm(h, wqkv_ref[...]) + bqkv_ref[...]
    q = qkv[:, 0:dim_pad]
    k = qkv[:, dim_pad:2 * dim_pad]
    v = qkv[:, 2 * dim_pad:3 * dim_pad]

    s = jax.lax.dot_general(q.astype(jnp.bfloat16), k.astype(jnp.bfloat16),
                            (((1,), (1,)), ((), ())),
                            preferred_element_type=f32)  # (rows, rows)
    s = s + bias_ref[...]
    s = s - jnp.max(s, axis=-1, keepdims=True)
    p = jnp.exp(s)
    p = p / jnp.sum(p, axis=-1, keepdims=True)           # exact softmax (f32)

    ctx = mm(p, v)                                       # (rows, dp)
    mh = mm(ctx, wo_ref[...]) + bo

    # ---- add & norm 1
    h = layer_norm(h + mh, g1, be1)

    # ---- feed forward: Linear -> ReLU -> Linear
    ff = mm(h, w1_ref[...]) + bf1_ref[...]
    ff = jnp.maximum(ff, 0.0)
    ff = mm(ff, w2_ref[...]) + bf2

    # ---- add & norm 2; write carry (HBM writeback only when batch tile changes)
    h_ref[...] = layer_norm(h + ff, g2, be2)


# ---------------------------------------------------------------------------
# Wrapper: pad / pack / fold params, then pallas_call
# ---------------------------------------------------------------------------
def attention_encoder(x, params, *, n_layers, dim, ff_dim, n_heads=1,
                      rows_target=256):
    assert n_heads == 1, "only n_heads=1 (module default) is implemented"
    (pos, wemb, bemb, wq, bq, wk, bk, wv, bv, wo, bo,
     g1, be1, w1, bf1, w2, bf2, g2, be2) = params

    B, T, D_in = x.shape
    assert pos.shape[0] == T, "positional embedding requires T == n_steps"

    dp = _round_up(dim, 128)
    fp = _round_up(ff_dim, 128)
    scale = math.sqrt(float(dim))                    # sqrt(dim) embedding scale
    head_scale = 1.0 / math.sqrt(dim // n_heads)     # MHA q-scaling
    bf16 = jnp.bfloat16

    # ---- batch tiling: ~rows_target rows per grid step (256 fills v6e/v7x MXU;
    #      use 128 on v5e), sublane-aligned; pad B up to a multiple of the tile.
    b_tile = min(B, max(1, rows_target // T))
    while (b_tile * T) % 8:
        b_tile += 1
    m_rows = b_tile * T
    B_pad = _round_up(B, b_tile)
    grid_b = B_pad // b_tile

    if B_pad != B:
        x = jnp.pad(x, ((0, B_pad - B), (0, 0), (0, 0)))
    x2 = x.reshape(B_pad * T, D_in).astype(jnp.float32)      # lane layout of x

    # ---- fold scales, zero-pad feature dims to multiples of 128, pack slabs,
    #      cast matmul weights to bf16 (biases / LN params stay f32).
    pos_p = jnp.tile(_pad_tail(pos, (T, dp)), (b_tile, 1))               # (rows, dp)
    wemb_p = _pad_tail(wemb * scale, (D_in, dp)).astype(bf16)
    bemb_p = _pad_tail(bemb * scale, (1, dp))
    wqkv = jnp.concatenate([_pad_tail(wq * head_scale, (dp, dp)),
                            _pad_tail(wk, (dp, dp)),
                            _pad_tail(wv, (dp, dp))], axis=-1).astype(bf16)  # (L,dp,3dp)
    bqkv = jnp.concatenate([_pad_tail(bq * head_scale, (1, dp)),
                            _pad_tail(bk, (1, dp)),
                            _pad_tail(bv, (1, dp))], axis=-1)                # (L,1,3dp)
    wo_p = _pad_tail(wo, (dp, dp)).astype(bf16)
    w1_p = _pad_tail(w1, (dp, fp)).astype(bf16)
    bf1_p = _pad_tail(bf1, (1, fp))
    w2_p = _pad_tail(w2, (fp, dp)).astype(bf16)
    # Small per-layer vectors packed into one slab: [bo, g1, be1, bf2, g2, be2]
    vecs = jnp.concatenate([_pad_tail(v_, (1, dp))
                            for v_ in (bo, g1, be1, bf2, g2, be2)], axis=1)  # (L,6,dp)

    # Block-diagonal additive attention bias: -1e30 where row/col belong to
    # different samples of the flattened row tile (finite, so exp underflows to 0).
    rid = jnp.arange(m_rows, dtype=jnp.int32) // T
    attn_bias = jnp.where(rid[:, None] == rid[None, :], 0.0, -1e30).astype(jnp.float32)

    kernel = functools.partial(attention_encoder_kernel, dim=dim, dim_pad=dp)

    def const_spec(a):                                   # fetched once, resident
        return pl.BlockSpec(a.shape, lambda i, l, _nd=a.ndim: (0,) * _nd)

    def layer_spec(a):                                   # streamed per layer
        return pl.BlockSpec((None,) + a.shape[1:],
                            lambda i, l, _nd=a.ndim: (l,) + (0,) * (_nd - 1))

    in_specs = [
        pl.BlockSpec((m_rows, D_in), lambda i, l: (i, 0)),   # x rows
        const_spec(attn_bias), const_spec(pos_p),
        const_spec(wemb_p), const_spec(bemb_p),
        layer_spec(wqkv), layer_spec(bqkv), layer_spec(wo_p),
        layer_spec(w1_p), layer_spec(bf1_p), layer_spec(w2_p), layer_spec(vecs),
    ]
    out_spec = pl.BlockSpec((m_rows, dp), lambda i, l: (i, 0))

    # ---- explicit scoped-VMEM budget (blocks + temporaries, generous headroom)
    est = 2 * _nbytes((m_rows, D_in), 4) + 2 * _nbytes((m_rows, dp), 4)
    est += _nbytes((m_rows, m_rows), 4) + _nbytes((m_rows, dp), 4)
    est += _nbytes((D_in, dp), 2) + _nbytes((1, dp), 4)
    per_layer = (_nbytes((dp, 3 * dp), 2) + _nbytes((1, 3 * dp), 4)
                 + _nbytes((dp, dp), 2) + _nbytes((dp, fp), 2)
                 + _nbytes((1, fp), 4) + _nbytes((fp, dp), 2) + _nbytes((6, dp), 4))
    est += 2 * per_layer
    est += (_nbytes((m_rows, 3 * dp), 4) + 2 * _nbytes((m_rows, m_rows), 4)
            + 2 * _nbytes((m_rows, fp), 4) + 4 * _nbytes((m_rows, dp), 4))
    vmem_limit = int(min(max(2 * est, 16 * 2 ** 20), 48 * 2 ** 20))

    out = pl.pallas_call(
        kernel,
        out_shape=jax.ShapeDtypeStruct((B_pad * T, dp), jnp.float32),
        grid=(grid_b, n_layers),
        in_specs=in_specs,
        out_specs=out_spec,
        compiler_params=pltpu.CompilerParams(
            dimension_semantics=("parallel", "arbitrary"),
            vmem_limit_bytes=vmem_limit),
    )(x2, attn_bias, pos_p, wemb_p, bemb_p,
      wqkv, bqkv, wo_p, w1_p, bf1_p, w2_p, vecs)

    # Downstream consumers could use the padded (.., dp) layout directly; the
    # slice is kept here only to return the module's exact output shape.
    return out.reshape(B_pad, T, dp)[:B, :, :dim]


# ---------------------------------------------------------------------------
# Pure-JAX reference (unpadded params, f32 HIGHEST-precision matmuls)
# ---------------------------------------------------------------------------
def reference_forward(x, params, *, n_layers, dim, n_heads):
    (pos, wemb, bemb, wq, bq, wk, bk, wv, bv, wo, bo,
     g1, be1, w1, bf1, w2, bf2, g2, be2) = params
    P = jax.lax.Precision.HIGHEST
    scale = math.sqrt(float(dim))
    hs = 1.0 / math.sqrt(dim // n_heads)

    def ln(t, g, b):
        m = t.mean(-1, keepdims=True)
        v = ((t - m) ** 2).mean(-1, keepdims=True)
        return (t - m) / jnp.sqrt(v + 1e-5) * g + b

    h = jnp.dot(x, wemb, precision=P) + bemb
    h = h * scale + pos[None]
    for l in range(n_layers):
        q = jnp.dot(h, wq[l], precision=P) + bq[l]
        k = jnp.dot(h, wk[l], precision=P) + bk[l]
        v = jnp.dot(h, wv[l], precision=P) + bv[l]
        s = jnp.einsum('btd,bsd->bts', q, k, precision=P) * hs
        p = jax.nn.softmax(s, axis=-1)
        ctx = jnp.einsum('bts,bsd->btd', p, v, precision=P)
        mh = jnp.dot(ctx, wo[l], precision=P) + bo[l]
        h = ln(h + mh, g1[l], be1[l])
        ff = jnp.dot(jnp.maximum(jnp.dot(h, w1[l], precision=P) + bf1[l], 0.0),
                     w2[l], precision=P) + bf2[l]
        h = ln(h + ff, g2[l], be2[l])
    return h


# ---------------------------------------------------------------------------
# Main
# ---------------------------------------------------------------------------
if __name__ == "__main__":
    B, n_steps, input_dim = 2, 8, 16
    dim, ff_dim, n_heads, n_layers = 32, 64, 1, 2

    key = jax.random.PRNGKey(0)
    ks = jax.random.split(key, 20)

    def rnd(k, shape, s=0.1):
        return jax.random.normal(k, shape, dtype=jnp.float32) * s

    x = jax.random.normal(ks[0], (B, n_steps, input_dim), dtype=jnp.float32)

    pos_emb = rnd(ks[1], (n_steps, dim))                  # Embedding(n_steps, dim) @ arange(T)
    wemb = rnd(ks[2], (input_dim, dim))                   # Linear(input_dim, dim)
    bemb = rnd(ks[3], (1, dim))

    L = n_layers
    wq = rnd(ks[4], (L, dim, dim));   bq = rnd(ks[5], (L, 1, dim))    # MHA in_proj q/k/v
    wk = rnd(ks[6], (L, dim, dim));   bk = rnd(ks[7], (L, 1, dim))
    wv = rnd(ks[8], (L, dim, dim));   bv = rnd(ks[9], (L, 1, dim))
    wo = rnd(ks[10], (L, dim, dim));  bo = rnd(ks[11], (L, 1, dim))   # MHA out_proj
    g1 = 1.0 + rnd(ks[12], (L, 1, dim), 0.05)                         # LayerNorm 1
    be1 = rnd(ks[13], (L, 1, dim), 0.05)
    w1 = rnd(ks[14], (L, dim, ff_dim)); bf1 = rnd(ks[15], (L, 1, ff_dim))  # FF Linear 1
    w2 = rnd(ks[16], (L, ff_dim, dim)); bf2 = rnd(ks[17], (L, 1, dim))     # FF Linear 2
    g2 = 1.0 + rnd(ks[18], (L, 1, dim), 0.05)                         # LayerNorm 2
    be2 = rnd(ks[19], (L, 1, dim), 0.05)

    params = [pos_emb, wemb, bemb, wq, bq, wk, bk, wv, bv, wo, bo,
              g1, be1, w1, bf1, w2, bf2, g2, be2]

    out = attention_encoder(x, params, n_layers=n_layers, dim=dim,
                            ff_dim=ff_dim, n_heads=n_heads)
    out = jax.block_until_ready(out)

    ref = reference_forward(x, params, n_layers=n_layers, dim=dim, n_heads=n_heads)
    ref = jax.block_until_ready(ref)

    assert out.shape == (B, n_steps, dim)
    # Tolerance sized for bf16 MXU inputs (f32 accumulation) vs. an f32
    # HIGHEST-precision reference across 2 residual/LayerNorm layers.
    assert jnp.allclose(out, ref, rtol=4e-2, atol=4e-2), \
        "Pallas output mismatch vs JAX reference"

    print("KERNEL_OK")
</pallas_src>

<mosaic_0001>
module attributes {stable_mosaic.version = 11 : i64} {
  func.func @attention_encoder_kernel(%arg0: i32, %arg1: i32, %arg2: memref<16x16xf32, #tpu.memory_space<vmem>>, %arg3: memref<16x16xf32, #tpu.memory_space<vmem>>, %arg4: memref<16x128xf32, #tpu.memory_space<vmem>>, %arg5: memref<16x128xbf16, #tpu.memory_space<vmem>>, %arg6: memref<1x128xf32, #tpu.memory_space<vmem>>, %arg7: memref<1x128x384xbf16, #tpu.memory_space<vmem>>, %arg8: memref<1x1x384xf32, #tpu.memory_space<vmem>>, %arg9: memref<1x128x128xbf16, #tpu.memory_space<vmem>>, %arg10: memref<1x128x128xbf16, #tpu.memory_space<vmem>>, %arg11: memref<1x1x128xf32, #tpu.memory_space<vmem>>, %arg12: memref<1x128x128xbf16, #tpu.memory_space<vmem>>, %arg13: memref<1x6x128xf32, #tpu.memory_space<vmem>>, %arg14: memref<16x128xf32, #tpu.memory_space<vmem>>) attributes {dimension_semantics = [#tpu.dimension_semantics<parallel>, #tpu.dimension_semantics<arbitrary>], iteration_bounds = array<i64: 1, 2>, scalar_prefetch = 0 : i64, scratch_operands = 0 : i64, tpu.core_type = #tpu.core_type<tc>, window_params = [{transform_indices = @transform_0, window_bounds = array<i64: 16, 16>}, {pipeline_mode = #tpu.pipeline_mode<synchronous>, transform_indices = @transform_1, window_bounds = array<i64: 16, 16>}, {pipeline_mode = #tpu.pipeline_mode<synchronous>, transform_indices = @transform_2, window_bounds = array<i64: 16, 128>}, {pipeline_mode = #tpu.pipeline_mode<synchronous>, transform_indices = @transform_3, window_bounds = array<i64: 16, 128>}, {pipeline_mode = #tpu.pipeline_mode<synchronous>, transform_indices = @transform_4, window_bounds = array<i64: 1, 128>}, {transform_indices = @transform_5, window_bounds = array<i64: 1, 128, 384>}, {transform_indices = @transform_6, window_bounds = array<i64: 1, 1, 384>}, {transform_indices = @transform_7, window_bounds = array<i64: 1, 128, 128>}, {transform_indices = @transform_8, window_bounds = array<i64: 1, 128, 128>}, {transform_indices = @transform_9, window_bounds = array<i64: 1, 1, 128>}, {transform_indices = @transform_10, window_bounds = array<i64: 1, 128, 128>}, {transform_indices = @transform_11, window_bounds = array<i64: 1, 6, 128>}, {transform_indices = @transform_12, window_bounds = array<i64: 16, 128>}]} {
    %0 = tpu.iota {dimensions = array<i32: 1>} : vector<1x128xi32>
    %c32_i32 = arith.constant 32 : i32
    %1 = vector.broadcast %c32_i32 : i32 to vector<1x128xi32>
    %2 = arith.cmpi slt, %0, %1 : vector<1x128xi32>
    %3 = arith.extui %2 : vector<1x128xi1> to vector<1x128xi32>
    %4 = arith.sitofp %3 : vector<1x128xi32> to vector<1x128xf32>
    %c0_i32 = arith.constant 0 : i32
    %5 = arith.cmpi eq, %arg1, %c0_i32 : i32
    %6 = arith.extui %5 : i1 to i32
    %c0_i32_0 = arith.constant 0 : i32
    %7 = arith.cmpi ne, %6, %c0_i32_0 : i32
    scf.if %7 {
      %c0_45 = arith.constant 0 : index
      %c0_46 = arith.constant 0 : index
      %114 = vector.load %arg2[%c0_45, %c0_46] : memref<16x16xf32, #tpu.memory_space<vmem>>, vector<16x16xf32>
      %c0_47 = arith.constant 0 : index
      %c0_48 = arith.constant 0 : index
      %115 = vector.load %arg5[%c0_47, %c0_48] : memref<16x128xbf16, #tpu.memory_space<vmem>>, vector<16x128xbf16>
      %116 = arith.truncf %114 : vector<16x16xf32> to vector<16x16xbf16>
      %cst_49 = arith.constant dense<0.000000e+00> : vector<16x128xf32>
      %117 = tpu.matmul %116, %115, %cst_49 {dimension_numbers = #tpu.dot_dimension_numbers<[1], [0], [0], [1], [0, 0, 1, 1], [], []>} : vector<16x16xbf16>, vector<16x128xbf16>, vector<16x128xf32> -> vector<16x128xf32>
      %c0_50 = arith.constant 0 : index
      %c0_51 = arith.constant 0 : index
      %118 = vector.load %arg6[%c0_50, %c0_51] : memref<1x128xf32, #tpu.memory_space<vmem>>, vector<1x128xf32>
      %119 = vector.broadcast %118 : vector<1x128xf32> to vector<16x128xf32>
      %120 = arith.addf %117, %119 : vector<16x128xf32>
      %c0_52 = arith.constant 0 : index
      %c0_53 = arith.constant 0 : index
      %121 = vector.load %arg4[%c0_52, %c0_53] : memref<16x128xf32, #tpu.memory_space<vmem>>, vector<16x128xf32>
      %122 = arith.addf %120, %121 : vector<16x128xf32>
      %c0_54 = arith.constant 0 : index
      %c0_55 = arith.constant 0 : index
      %123 = vector.load %arg14[%c0_54, %c0_55] : memref<16x128xf32, #tpu.memory_space<vmem>>, vector<16x128xf32>
      tpu.vector_store %arg14[%c0_54, %c0_55], %122 {strides = array<i32>} : memref<16x128xf32, #tpu.memory_space<vmem>>, vector<16x128xf32>,
    } else {
    }
    %c0 = arith.constant 0 : index
    %c0_1 = arith.constant 0 : index
    %8 = vector.load %arg14[%c0, %c0_1] : memref<16x128xf32, #tpu.memory_space<vmem>>, vector<16x128xf32>
    %c0_2 = arith.constant 0 : index
    %c0_3 = arith.constant 0 : index
    %c0_4 = arith.constant 0 : index
    %9 = vector.load %arg13[%c0_2, %c0_3, %c0_4] : memref<1x6x128xf32, #tpu.memory_space<vmem>>, vector<1x6x128xf32>
    %10 = vector.shape_cast %9 : vector<1x6x128xf32> to vector<6x128xf32>
    %11 = vector.extract_strided_slice %10 {offsets = [0, 0], sizes = [1, 128], strides = [1, 1]} : vector<6x128xf32> to vector<1x128xf32>
    %12 = vector.extract_strided_slice %10 {offsets = [1, 0], sizes = [1, 128], strides = [1, 1]} : vector<6x128xf32> to vector<1x128xf32>
    %13 = vector.extract_strided_slice %10 {offsets = [2, 0], sizes = [1, 128], strides = [1, 1]} : vector<6x128xf32> to vector<1x128xf32>
    %14 = vector.extract_strided_slice %10 {offsets = [3, 0], sizes = [1, 128], strides = [1, 1]} : vector<6x128xf32> to vector<1x128xf32>
    %15 = vector.extract_strided_slice %10 {offsets = [4, 0], sizes = [1, 128], strides = [1, 1]} : vector<6x128xf32> to vector<1x128xf32>
    %16 = vector.extract_strided_slice %10 {offsets = [5, 0], sizes = [1, 128], strides = [1, 1]} : vector<6x128xf32> to vector<1x128xf32>
    %c0_5 = arith.constant 0 : index
    %c0_6 = arith.constant 0 : index
    %c0_7 = arith.constant 0 : index
    %17 = vector.load %arg7[%c0_5, %c0_6, %c0_7] : memref<1x128x384xbf16, #tpu.memory_space<vmem>>, vector<1x128x384xbf16>
    %18 = vector.shape_cast %17 : vector<1x128x384xbf16> to vector<128x384xbf16>
    %19 = arith.truncf %8 : vector<16x128xf32> to vector<16x128xbf16>
    %cst = arith.constant dense<0.000000e+00> : vector<16x384xf32>
    %20 = tpu.matmul %19, %18, %cst {dimension_numbers = #tpu.dot_dimension_numbers<[1], [0], [0], [1], [0, 0, 1, 1], [], []>} : vector<16x128xbf16>, vector<128x384xbf16>, vector<16x384xf32> -> vector<16x384xf32>
    %c0_8 = arith.constant 0 : index
    %c0_9 = arith.constant 0 : index
    %c0_10 = arith.constant 0 : index
    %21 = vector.load %arg8[%c0_8, %c0_9, %c0_10] : memref<1x1x384xf32, #tpu.memory_space<vmem>>, vector<1x1x384xf32>
    %22 = vector.shape_cast %21 : vector<1x1x384xf32> to vector<1x384xf32>
    %23 = vector.broadcast %22 : vector<1x384xf32> to vector<16x384xf32>
    %24 = arith.addf %20, %23 : vector<16x384xf32>
    %25 = vector.extract_strided_slice %24 {offsets = [0, 0], sizes = [16, 128], strides = [1, 1]} : vector<16x384xf32> to vector<16x128xf32>
    %26 = vector.extract_strided_slice %24 {offsets = [0, 128], sizes = [16, 128], strides = [1, 1]} : vector<16x384xf32> to vector<16x128xf32>
    %27 = vector.extract_strided_slice %24 {offsets = [0, 256], sizes = [16, 128], strides = [1, 1]} : vector<16x384xf32> to vector<16x128xf32>
    %28 = arith.truncf %25 : vector<16x128xf32> to vector<16x128xbf16>
    %29 = arith.truncf %26 : vector<16x128xf32> to vector<16x128xbf16>
    %cst_11 = arith.constant dense<0.000000e+00> : vector<16x16xf32>
    %30 = tpu.matmul %28, %29, %cst_11 {dimension_numbers = #tpu.dot_dimension_numbers<[1], [1], [0], [0], [0, 0, 1, 0], [], []>} : vector<16x128xbf16>, vector<16x128xbf16>, vector<16x16xf32> -> vector<16x16xf32>
    %c0_12 = arith.constant 0 : index
    %c0_13 = arith.constant 0 : index
    %31 = vector.load %arg3[%c0_12, %c0_13] : memref<16x16xf32, #tpu.memory_space<vmem>>, vector<16x16xf32>
    %32 = arith.addf %30, %31 : vector<16x16xf32>
    %cst_14 = arith.constant dense<0xFF800000> : vector<16xf32>
    %33 = vector.multi_reduction <maximumf>, %32, %cst_14 [1] : vector<16x16xf32> to vector<16xf32>
    %34 = vector.shape_cast %33 : vector<16xf32> to vector<16x1xf32>
    %35 = vector.broadcast %34 : vector<16x1xf32> to vector<16x16xf32>
    %36 = arith.subf %32, %35 : vector<16x16xf32>
    %37 = math.exp %36 : vector<16x16xf32>
    %cst_15 = arith.constant dense<0.000000e+00> : vector<16xf32>
    %38 = vector.multi_reduction <add>, %37, %cst_15 [1] : vector<16x16xf32> to vector<16xf32>
    %39 = vector.shape_cast %38 : vector<16xf32> to vector<16x1xf32>
    %40 = vector.broadcast %39 : vector<16x1xf32> to vector<16x16xf32>
    %41 = arith.divf %37, %40 : vector<16x16xf32>
    %42 = arith.truncf %41 : vector<16x16xf32> to vector<16x16xbf16>
    %43 = arith.truncf %27 : vector<16x128xf32> to vector<16x128xbf16>
    %cst_16 = arith.constant dense<0.000000e+00> : vector<16x128xf32>
    %44 = tpu.matmul %42, %43, %cst_16 {dimension_numbers = #tpu.dot_dimension_numbers<[1], [0], [0], [1], [0, 0, 1, 1], [], []>} : vector<16x16xbf16>, vector<16x128xbf16>, vector<16x128xf32> -> vector<16x128xf32>
    %c0_17 = arith.constant 0 : index
    %c0_18 = arith.constant 0 : index
    %c0_19 = arith.constant 0 : index
    %45 = vector.load %arg9[%c0_17, %c0_18, %c0_19] : memref<1x128x128xbf16, #tpu.memory_space<vmem>>, vector<1x128x128xbf16>
    %46 = vector.shape_cast %45 : vector<1x128x128xbf16> to vector<128x128xbf16>
    %47 = arith.truncf %44 : vector<16x128xf32> to vector<16x128xbf16>
    %cst_20 = arith.constant dense<0.000000e+00> : vector<16x128xf32>
    %48 = tpu.matmul %47, %46, %cst_20 {dimension_numbers = #tpu.dot_dimension_numbers<[1], [0], [0], [1], [0, 0, 1, 1], [], []>} : vector<16x128xbf16>, vector<128x128xbf16>, vector<16x128xf32> -> vector<16x128xf32>
    %49 = vector.broadcast %11 : vector<1x128xf32> to vector<16x128xf32>
    %50 = arith.addf %48, %49 : vector<16x128xf32>
    %51 = arith.addf %8, %50 : vector<16x128xf32>
    %cst_21 = arith.constant dense<0.000000e+00> : vector<16xf32>
    %52 = vector.multi_reduction <add>, %51, %cst_21 [1] : vector<16x128xf32> to vector<16xf32>
    %53 = vector.shape_cast %52 : vector<16xf32> to vector<16x1xf32>
    %cst_22 = arith.constant 3.125000e-02 : f32
    %54 = vector.broadcast %cst_22 : f32 to vector<16x1xf32>
    %55 = arith.mulf %53, %54 : vector<16x1xf32>
    %56 = vector.broadcast %55 : vector<16x1xf32> to vector<16x128xf32>
    %57 = arith.subf %51, %56 : vector<16x128xf32>
    %58 = vector.broadcast %4 : vector<1x128xf32> to vector<16x128xf32>
    %59 = arith.mulf %57, %58 : vector<16x128xf32>
    %60 = arith.mulf %59, %59 : vector<16x128xf32>
    %cst_23 = arith.constant dense<0.000000e+00> : vector<16xf32>
    %61 = vector.multi_reduction <add>, %60, %cst_23 [1] : vector<16x128xf32> to vector<16xf32>
    %62 = vector.shape_cast %61 : vector<16xf32> to vector<16x1xf32>
    %cst_24 = arith.constant 3.125000e-02 : f32
    %63 = vector.broadcast %cst_24 : f32 to vector<16x1xf32>
    %64 = arith.mulf %62, %63 : vector<16x1xf32>
    %cst_25 = arith.constant 9.99999974E-6 : f32
    %65 = vector.broadcast %cst_25 : f32 to vector<16x1xf32>
    %66 = arith.addf %64, %65 : vector<16x1xf32>
    %67 = math.rsqrt %66 : vector<16x1xf32>
    %68 = vector.broadcast %67 : vector<16x1xf32> to vector<16x128xf32>
    %69 = arith.mulf %59, %68 : vector<16x128xf32>
    %70 = vector.broadcast %12 : vector<1x128xf32> to vector<16x128xf32>
    %71 = arith.mulf %69, %70 : vector<16x128xf32>
    %72 = vector.broadcast %13 : vector<1x128xf32> to vector<16x128xf32>
    %73 = arith.addf %71, %72 : vector<16x128xf32>
    %c0_26 = arith.constant 0 : index
    %c0_27 = arith.constant 0 : index
    %c0_28 = arith.constant 0 : index
    %74 = vector.load %arg10[%c0_26, %c0_27, %c0_28] : memref<1x128x128xbf16, #tpu.memory_space<vmem>>, vector<1x128x128xbf16>
    %75 = vector.shape_cast %74 : vector<1x128x128xbf16> to vector<128x128xbf16>
    %76 = arith.truncf %73 : vector<16x128xf32> to vector<16x128xbf16>
    %cst_29 = arith.constant dense<0.000000e+00> : vector<16x128xf32>
    %77 = tpu.matmul %76, %75, %cst_29 {dimension_numbers = #tpu.dot_dimension_numbers<[1], [0], [0], [1], [0, 0, 1, 1], [], []>} : vector<16x128xbf16>, vector<128x128xbf16>, vector<16x128xf32> -> vector<16x128xf32>
    %c0_30 = arith.constant 0 : index
    %c0_31 = arith.constant 0 : index
    %c0_32 = arith.constant 0 : index
    %78 = vector.load %arg11[%c0_30, %c0_31, %c0_32] : memref<1x1x128xf32, #tpu.memory_space<vmem>>, vector<1x1x128xf32>
    %79 = vector.shape_cast %78 : vector<1x1x128xf32> to vector<1x128xf32>
    %80 = vector.broadcast %79 : vector<1x128xf32> to vector<16x128xf32>
    %81 = arith.addf %77, %80 : vector<16x128xf32>
    %cst_33 = arith.constant 0.000000e+00 : f32
    %82 = vector.broadcast %cst_33 : f32 to vector<16x128xf32>
    %83 = arith.maximumf %81, %82 : vector<16x128xf32>
    %c0_34 = arith.constant 0 : index
    %c0_35 = arith.constant 0 : index
    %c0_36 = arith.constant 0 : index
    %84 = vector.load %arg12[%c0_34, %c0_35, %c0_36] : memref<1x128x128xbf16, #tpu.memory_space<vmem>>, vector<1x128x128xbf16>
    %85 = vector.shape_cast %84 : vector<1x128x128xbf16> to vector<128x128xbf16>
    %86 = arith.truncf %83 : vector<16x128xf32> to vector<16x128xbf16>
    %cst_37 = arith.constant dense<0.000000e+00> : vector<16x128xf32>
    %87 = tpu.matmul %86, %85, %cst_37 {dimension_numbers = #tpu.dot_dimension_numbers<[1], [0], [0], [1], [0, 0, 1, 1], [], []>} : vector<16x128xbf16>, vector<128x128xbf16>, vector<16x128xf32> -> vector<16x128xf32>
    %88 = vector.broadcast %14 : vector<1x128xf32> to vector<16x128xf32>
    %89 = arith.addf %87, %88 : vector<16x128xf32>
    %90 = arith.addf %73, %89 : vector<16x128xf32>
    %cst_38 = arith.constant dense<0.000000e+00> : vector<16xf32>
    %91 = vector.multi_reduction <add>, %90, %cst_38 [1] : vector<16x128xf32> to vector<16xf32>
    %92 = vector.shape_cast %91 : vector<16xf32> to vector<16x1xf32>
    %cst_39 = arith.constant 3.125000e-02 : f32
    %93 = vector.broadcast %cst_39 : f32 to vector<16x1xf32>
    %94 = arith.mulf %92, %93 : vector<16x1xf32>
    %95 = vector.broadcast %94 : vector<16x1xf32> to vector<16x128xf32>
    %96 = arith.subf %90, %95 : vector<16x128xf32>
    %97 = vector.broadcast %4 : vector<1x128xf32> to vector<16x128xf32>
    %98 = arith.mulf %96, %97 : vector<16x128xf32>
    %99 = arith.mulf %98, %98 : vector<16x128xf32>
    %cst_40 = arith.constant dense<0.000000e+00> : vector<16xf32>
    %100 = vector.multi_reduction <add>, %99, %cst_40 [1] : vector<16x128xf32> to vector<16xf32>
    %101 = vector.shape_cast %100 : vector<16xf32> to vector<16x1xf32>
    %cst_41 = arith.constant 3.125000e-02 : f32
    %102 = vector.broadcast %cst_41 : f32 to vector<16x1xf32>
    %103 = arith.mulf %101, %102 : vector<16x1xf32>
    %cst_42 = arith.constant 9.99999974E-6 : f32
    %104 = vector.broadcast %cst_42 : f32 to vector<16x1xf32>
    %105 = arith.addf %103, %104 : vector<16x1xf32>
    %106 = math.rsqrt %105 : vector<16x1xf32>
    %107 = vector.broadcast %106 : vector<16x1xf32> to vector<16x128xf32>
    %108 = arith.mulf %98, %107 : vector<16x128xf32>
    %109 = vector.broadcast %15 : vector<1x128xf32> to vector<16x128xf32>
    %110 = arith.mulf %108, %109 : vector<16x128xf32>
    %111 = vector.broadcast %16 : vector<1x128xf32> to vector<16x128xf32>
    %112 = arith.addf %110, %111 : vector<16x128xf32>
    %c0_43 = arith.constant 0 : index
    %c0_44 = arith.constant 0 : index
    %113 = vector.load %arg14[%c0_43, %c0_44] : memref<16x128xf32, #tpu.memory_space<vmem>>, vector<16x128xf32>
    tpu.vector_store %arg14[%c0_43, %c0_44], %112 {strides = array<i32>} : memref<16x128xf32, #tpu.memory_space<vmem>>, vector<16x128xf32>,
    return
  }
  func.func @transform_0(%arg0: i32, %arg1: i32) -> (i32, i32) {
    %c0_i32 = arith.constant 0 : i32
    %c0_i32_0 = arith.constant 0 : i32
    return %arg0, %c0_i32 : i32, i32
  }
  func.func @transform_1(%arg0: i32, %arg1: i32) -> (i32, i32) {
    %c0_i32 = arith.constant 0 : i32
    %c0_i32_0 = arith.constant 0 : i32
    %c0_i32_1 = arith.constant 0 : i32
    return %c0_i32, %c0_i32_0 : i32, i32
  }
  func.func @transform_2(%arg0: i32, %arg1: i32) -> (i32, i32) {
    %c0_i32 = arith.constant 0 : i32
    %c0_i32_0 = arith.constant 0 : i32
    %c0_i32_1 = arith.constant 0 : i32
    return %c0_i32, %c0_i32_0 : i32, i32
  }
  func.func @transform_3(%arg0: i32, %arg1: i32) -> (i32, i32) {
    %c0_i32 = arith.constant 0 : i32
    %c0_i32_0 = arith.constant 0 : i32
    %c0_i32_1 = arith.constant 0 : i32
    return %c0_i32, %c0_i32_0 : i32, i32
  }
  func.func @transform_4(%arg0: i32, %arg1: i32) -> (i32, i32) {
    %c0_i32 = arith.constant 0 : i32
    %c0_i32_0 = arith.constant 0 : i32
    %c0_i32_1 = arith.constant 0 : i32
    return %c0_i32, %c0_i32_0 : i32, i32
  }
  func.func @transform_5(%arg0: i32, %arg1: i32) -> (i32, i32, i32) {
    %c0_i32 = arith.constant 0 : i32
    %c0_i32_0 = arith.constant 0 : i32
    %c0_i32_1 = arith.constant 0 : i32
    return %arg1, %c0_i32, %c0_i32_0 : i32, i32, i32
  }
  func.func @transform_6(%arg0: i32, %arg1: i32) -> (i32, i32, i32) {
    %c0_i32 = arith.constant 0 : i32
    %c0_i32_0 = arith.constant 0 : i32
    %c0_i32_1 = arith.constant 0 : i32
    return %arg1, %c0_i32, %c0_i32_0 : i32, i32, i32
  }
  func.func @transform_7(%arg0: i32, %arg1: i32) -> (i32, i32, i32) {
    %c0_i32 = arith.constant 0 : i32
    %c0_i32_0 = arith.constant 0 : i32
    %c0_i32_1 = arith.constant 0 : i32
    return %arg1, %c0_i32, %c0_i32_0 : i32, i32, i32
  }
  func.func @transform_8(%arg0: i32, %arg1: i32) -> (i32, i32, i32) {
    %c0_i32 = arith.constant 0 : i32
    %c0_i32_0 = arith.constant 0 : i32
    %c0_i32_1 = arith.constant 0 : i32
    return %arg1, %c0_i32, %c0_i32_0 : i32, i32, i32
  }
  func.func @transform_9(%arg0: i32, %arg1: i32) -> (i32, i32, i32) {
    %c0_i32 = arith.constant 0 : i32
    %c0_i32_0 = arith.constant 0 : i32
    %c0_i32_1 = arith.constant 0 : i32
    return %arg1, %c0_i32, %c0_i32_0 : i32, i32, i32
  }
  func.func @transform_10(%arg0: i32, %arg1: i32) -> (i32, i32, i32) {
    %c0_i32 = arith.constant 0 : i32
    %c0_i32_0 = arith.constant 0 : i32
    %c0_i32_1 = arith.constant 0 : i32
    return %arg1, %c0_i32, %c0_i32_0 : i32, i32, i32
  }
  func.func @transform_11(%arg0: i32, %arg1: i32) -> (i32, i32, i32) {
    %c0_i32 = arith.constant 0 : i32
    %c0_i32_0 = arith.constant 0 : i32
    %c0_i32_1 = arith.constant 0 : i32
    return %arg1, %c0_i32, %c0_i32_0 : i32, i32, i32
  }
  func.func @transform_12(%arg0: i32, %arg1: i32) -> (i32, i32) {
    %c0_i32 = arith.constant 0 : i32
    %c0_i32_0 = arith.constant 0 : i32
    return %arg0, %c0_i32 : i32, i32
  }
}

</mosaic_0001>

<bundles_post_ra>
// kernel: tpu_custom_call.1
= control target key start
LH: loop header
LB: loop body
LE: loop exit
PB: predicated region body
PF: predicated region fallthrough
CT: control target
= control target key end

     0   :  { %s3098_s0 = inlined_call_operand.vmem [shape: f32[16,16], index: 0, kind: input, shape index: {}]   ;;  %s3099_s1 = inlined_call_operand.hbm [shape: f32[16,16], index: 1, kind: input, shape index: {}]   ;;  %s3100_s2 = inlined_call_operand.vmem [shape: f32[16,128], index: 2, kind: input, shape index: {}]   ;;  %s3101_s3 = inlined_call_operand.hbm [shape: bf16[16,128], index: 3, kind: input, shape index: {}]   ;;  %s3102_s4 = inlined_call_operand.hbm [shape: f32[1,128], index: 4, kind: input, shape index: {}]   ;;  %s3103_s5 = inlined_call_operand.hbm [shape: bf16[2,128,384], index: 5, kind: input, shape index: {}]   ;;  %s3104_s6 = inlined_call_operand.vmem [shape: f32[2,1,384], index: 6, kind: input, shape index: {}]   ;;  %s3105_s7 = inlined_call_operand.hbm [shape: bf16[2,128,128], index: 7, kind: input, shape index: {}]   ;;  %s3106_s8 = inlined_call_operand.hbm [shape: bf16[2,128,128], index: 8, kind: input, shape index: {}]   ;;  %s3107_s9 = inlined_call_operand.vmem [shape: f32[2,1,128], index: 9, kind: input, shape index: {}]   ;;  %s3108_s10 = inlined_call_operand.hbm [shape: bf16[2,128,128], index: 10, kind: input, shape index: {}]   ;;  %s3109_s11 = inlined_call_operand.vmem [shape: f32[2,6,128], index: 11, kind: input, shape index: {}]   ;;  %s3110_s12 = inlined_call_operand.hbm [shape: f32[16,128], index: 12, kind: output, shape index: {}]  }
   0x1   :  { %3138 = sst [smem:[#allocation28_spill]] %s3098_s0 }
   0x2   :  { %3139 = sst [smem:[#allocation29_spill]] %s3100_s2 }
   0x3   :  { %3140 = sst [smem:[#allocation30_spill]] %s3101_s3 }
   0x4   :  { %3141 = sst [smem:[#allocation31_spill]] %s3103_s5 }
   0x5   :  { %3142 = sst [smem:[#allocation32_spill]] %s3104_s6 }
   0x6   :  { %3143 = sst [smem:[#allocation33_spill]] %s3106_s8 }
   0x7   :  { %3144 = sst [smem:[#allocation34_spill]] %s3107_s9 }
   0x8   :  { %3145 = sst [smem:[#allocation35_spill]] %s3109_s11 }
   0x9   :  { %3146 = sst [smem:[#allocation36_spill]] %s3110_s12 }
   0xa   :  { %17 = vsyncpa [#allocation3], 0 }
   0xb   :  { %18 = vsyncpa [#allocation6], 0 }
   0xc   :  { %19 = vsyncpa [#allocation9], 0 }
   0xd   :  { %21 = vsyncpa [#allocation9 + $0x1], 0 }
   0xe   :  { %22 = vsyncpa [#allocation12], 0 }
   0xf   :  { %24 = vsyncpa [#allocation12 + $0x1], 0 }
  0x10   :  { %25 = vsyncpa [#allocation4], 0  ;;  %s2559_s21 = smov 0   ;;  %s2561_s22 = smov 0  }
  0x11   :  { %s2563_s23 = smov 0   ;;  %s2565_s24 = smov 0  }
  0x12   :  { %s2567_s25 = smov 0   ;;  %s2569_s26 = smov 0  }
  0x13 LB: > { %3147 = sst [smem:[#allocation20_spill]] %s2455_s22  ;;  %s2588_s27 = sadd.s32 4294967295, %s2471_s26   ;;  %s2471_s26 = sphi %s2569_s26, %s31_s26   ;;  %s2467_s25 = sphi %s2567_s25, %s3192_s25   ;;  %s2463_s24 = sphi %s2565_s24, %s3191_s24   ;;  %s2459_s23 = sphi %s2563_s23, %s3190_s23   ;;  %s2455_s22 = sphi %s2561_s22, %s3189_s22   ;;  %s2451_s21 = sphi %s2559_s21, %s3188_s21  }
  0x14   : > { %3148 = sst [smem:[#allocation21_spill]] %s2459_s23  ;;  %p173_p0 = scmp.ne.s32.totalorder %s2455_s22, %s2451_s21 }
  0x15   : > { %3149 = sst [smem:[#allocation22_spill]] %s2463_s24  ;;  %p3112_p1 = scmp.eq.s32.totalorder %s2588_s27, 0 }
  0x16   : > { %3150 = sst [smem:[#allocation23_spill]] %s2467_s25  ;;  %p1751_p2 = scmp.ge.s32.totalorder %s2471_s26, 1 }
  0x17   : > { %3151 = sst [smem:[#allocation24_spill]] %s2471_s26  ;;  %p366_p3 = scmp.lt.s32.totalorder %s2471_s26, 3 }
  0x18   : > { %p2596_p4 = por %p3112_p1, %p173_p0  ;;  %s2473_s30 = smov [#allocation5]  }
  0x19   : > { %p2600_p5 = pnand %p1751_p2, %p366_p3  ;;  %s403_s13 = sshll.u32 %s2473_s30, 4  ;;  %s404_s13 = int_to_ptr.vmem [resolvable:$true] %s403_s13 }
  0x1a   : > { %s3152_s28 = scalar_select %p2596_p4, 1, 0 }
  0x1b   : > { %s3154_s29 = scalar_select %p2600_p5, 1, 0 }
  0x1c   : > { %3153 = sst [smem:[#allocation25_spill]] %s3152_s28  ;;  %p2005_p6 = pneg %p2600_p5 }
  0x1d   : > { %s40_s15 = sadd.s32 1, %s2467_s25  ;;  %s3156_s3 = sld [smem:[#allocation30_spill]] }
  0x1e   : > { %p2608_p7 = pnand %p2005_p6, %p3112_p1 }
  0x20   : > { %s3155_s14 = scalar_select %p2608_p7, 1, 0 }
  0x21   : > { %p2621_p9 = pneg %p2608_p7 }
  0x23   : > { %s2175_s18 = scalar_lea.hbm %s3156_s3, 128 }
  0x24   : > { %p2176_p8 = scmp.ne.s32.totalorder %s3156_s3, %s2175_s18  ;;  %p2182_p12 = scmp.lt.u32.totalorder %s2175_s18, %s3156_s3 }
  0x25   : > { %s3157_s21 = scalar_select %p2621_p9, 1, 0 }
  0x26   : > { %p2178_p10 = pnand %p2621_p9, %p2176_p8 }
  0x28   : > { %p2179_p11 = pneg %p2178_p10 }
  0x2a   : > { %p2184_p13 = pnand %p2182_p12, %p2179_p11 }
  0x2c   : > { %2187 = shalt.err (!%p2184_p13)
}
  0x2d   : > { %s2188_s16 = scalar_lea.vmem %s404_s13, 128  ;;  %p2196_p6 = scmp.lt.s32.totalorder %s404_s13, %s404_s13 }
  0x2e   : > { %p2189_p0 = scmp.ne.s32.totalorder %s404_s13, %s2188_s16  ;;  %p2197_p1 = scmp.lt.s32.totalorder %s2188_s16, %s2188_s16 }
  0x30   : > { %p2191_p2 = pnand %p2189_p0, %p2621_p9  ;;  %p2198_p4 = por %p2197_p1, %p2196_p6 }
  0x32   : > { %p2192_p3 = pneg %p2191_p2 }
  0x34   : > { %p2199_p5 = pnand %p2198_p4, %p2192_p3 }
  0x36   : > { %2202 = shalt.err (!%p2199_p5)
}
  0x37   : > { %s3117_s17 = smov 64   ;;  %s3119_s12 = smov 4  }
  0x38   : > { %2011 = dma.hbm_to_vmem [thread:$0]  (!%p2608_p7), %s3156_s3, 128, %s404_s13, [#allocation6], %s3117_s17, %s3117_s17, %s3119_s12  }
  0x39   : > { %p41_p1 = scmp.ge.s32.totalorder %s40_s15, 2  ;;  %s160_s20 = sadd.s32 1, %s2459_s23 }
  0x3a   : > { %p167_p4 = scmp.ne.s32.totalorder %s2459_s23, %s2455_s22  ;;  %p168_p5 = scmp.eq.s32.totalorder %s2471_s26, 0 }
  0x3b   : > { %s3194_s15 = smov (%p41_p1, %s40_s15), 0  ;;  %p2031_p10 = scmp.lt.s32.totalorder %s2471_s26, 2 }
  0x3c   : > { %3158 = sst [smem:[#allocation26_spill]] %s3194_s15  ;;  %p169_p8 = por %p168_p5, %p167_p4 }
  0x3d   : > { %s157_s30 = ssub.s32 %s2467_s25, %s3194_s15  ;;  %s3122_s16 = sand.u32 1, %s2471_s26  }
  0x3e   : > { %p158_p11 = scmp.eq.s32.totalorder %s157_s30, 0  ;;  %s430_s2 = sand.u32 1, %s2459_s23  }
  0x3f   : > { %s1978_s0 = smul.u32 3072, %s2467_s25  ;;  %s3160_s5 = sld [smem:[#allocation31_spill]] }
  0x40   : > { %s2653_s11 = scalar_select %p158_p11, %s2459_s23, %s160_s20  }
  0x41   : > { %s1977_s6 = smul.u32 192, %s430_s2  ;;  %p2660_p12 = pnand %p2031_p10, %p169_p8 }
  0x42   : > { %3159 = sst [smem:[#allocation27_spill]] %s2653_s11  ;;  %s2666_s20 = sshll.u32 %s430_s2, 6 }
  0x43   : > { %s3161_s17 = scalar_select %p2660_p12, 1, 0 }
  0x44   : > { %s432_s30 = scalar_lea.vmem [#allocation8], %s1977_s6  ;;  %s2670_s3 = scalar_lea.sflag [#allocation9], %s3122_s16 }
  0x45   : > { %s2658_s19 = scalar_lea.hbm %s3160_s5, %s1978_s0  ;;  %s439_s12 = sshll.u32 %s432_s30, 4  ;;  %s2664_s12 = int_to_ptr.vmem [resolvable:$true] %s439_s12 }
  0x46   : > { %s2203_s0 = scalar_lea.hbm %s2658_s19, 3072  ;;  %p2676_p0 = pneg %p2660_p12 }
  0x47   : > { %p2204_p13 = scmp.ne.s32.totalorder %s2658_s19, %s2203_s0  ;;  %s2208_s30 = scalar_lea.hbm %s3160_s5, 6144 }
  0x48   : > { %s3162_s18 = scalar_select %p2676_p0, 1, 0 }
  0x49   : > { %p2206_p2 = pnand %p2676_p0, %p2204_p13  ;;  %p2209_p6 = scmp.lt.u32.totalorder %s2658_s19, %s3160_s5 }
  0x4a   : > { %p2210_p1 = scmp.lt.u32.totalorder %s2208_s30, %s2203_s0  ;;  %p2212_p5 = scmp.lt.u32.totalorder %s2203_s0, %s2658_s19 }
  0x4b   : > { %p2207_p3 = pneg %p2206_p2 }
  0x4c   : > { %p2211_p4 = por %p2210_p1, %p2209_p6 }
  0x4e   : > { %p2213_p8 = por %p2212_p5, %p2211_p4 }
  0x50   : > { %p2214_p10 = pnand %p2213_p8, %p2207_p3 }
  0x52   : > { %2217 = shalt.err (!%p2214_p10)
}
  0x53   : > { %s2218_s16 = scalar_lea.vmem %s2664_s12, 3072  ;;  %s2476_s6 = smov [#allocation8]  }
  0x54   : > { %p2219_p11 = scmp.ne.s32.totalorder %s2664_s12, %s2218_s16  ;;  %s2223_s13 = sshll.u32 %s2476_s6, 4  ;;  %s2224_s13 = int_to_ptr.vmem [resolvable:$false] %s2223_s13 }
  0x55   : > { %s2225_s15 = scalar_lea.vmem %s2224_s13, 6144  ;;  %p2226_p7 = scmp.lt.s32.totalorder %s2664_s12, %s2224_s13 }
  0x56   : > { %p2221_p13 = pnand %p2219_p11, %p2676_p0  ;;  %p2227_p9 = scmp.lt.s32.totalorder %s2225_s15, %s2218_s16 }
  0x58   : > { %p2222_p2 = pneg %p2221_p13  ;;  %p2228_p6 = por %p2227_p9, %p2226_p7 }
  0x5a   : > { %p2229_p1 = pnand %p2228_p6, %p2222_p2 }
  0x5c   : > { %2232 = shalt.err (!%p2229_p1)
}
  0x5d   : > { %s2477_s0 = smov 192   ;;  %s2478_s30 = smov 12  }
  0x5e   : > { %2018 = dma.hbm_to_vmem [thread:$0]  (!%p2660_p12), %s2658_s19, 3072, %s2664_s12, %s2670_s3, %s2477_s0, %s2477_s0, %s2478_s30  }
  0x5f   : > { %s2701_s2 = sshll.u32 %s2467_s25, 10  ;;  %s3163_s8 = sld [smem:[#allocation33_spill]] }
  0x60   : > { %s481_s15 = scalar_lea.vmem [#allocation11], %s2666_s20  ;;  %s3164_s11 = sand.u32 1, %s2471_s26  }
  0x61   : > { %s488_s5 = sshll.u32 %s481_s15, 4  ;;  %s2714_s23 = scalar_lea.sflag [#allocation12], %s3164_s11  ;;  %s2710_s5 = int_to_ptr.vmem [resolvable:$true] %s488_s5 }
  0x65   : > { %s2707_s13 = scalar_lea.hbm %s3163_s8, %s2701_s2  ;;  %s2238_s30 = scalar_lea.hbm %s3163_s8, 2048 }
  0x66   : > { %s2233_s12 = scalar_lea.hbm %s2707_s13, 1024  ;;  %p2239_p4 = scmp.lt.u32.totalorder %s2707_s13, %s3163_s8 }
  0x67   : > { %p2234_p7 = scmp.ne.s32.totalorder %s2707_s13, %s2233_s12  ;;  %p2240_p5 = scmp.lt.u32.totalorder %s2238_s30, %s2233_s12 }
  0x68   : > { %p2242_p10 = scmp.lt.u32.totalorder %s2233_s12, %s2707_s13 }
  0x69   : > { %p2236_p9 = pnand %p2234_p7, %p2676_p0  ;;  %p2241_p8 = por %p2240_p5, %p2239_p4 }
  0x6b   : > { %p2237_p3 = pneg %p2236_p9  ;;  %p2243_p11 = por %p2242_p10, %p2241_p8 }
  0x6d   : > { %p2244_p13 = pnand %p2243_p11, %p2237_p3 }
  0x6f   : > { %2247 = shalt.err (!%p2244_p13)
}
  0x70   : > { %s2248_s11 = scalar_lea.vmem %s2710_s5, 1024  ;;  %s2479_s15 = smov [#allocation11]  }
  0x71   : > { %p2249_p2 = scmp.ne.s32.totalorder %s2710_s5, %s2248_s11  ;;  %s2253_s19 = sshll.u32 %s2479_s15, 4  ;;  %s2254_s19 = int_to_ptr.vmem [resolvable:$false] %s2253_s19 }
  0x72   : > { %s2255_s0 = scalar_lea.vmem %s2254_s19, 2048  ;;  %p2256_p7 = scmp.lt.s32.totalorder %s2710_s5, %s2254_s19 }
  0x73   : > { %p2251_p6 = pnand %p2249_p2, %p2676_p0  ;;  %p2257_p9 = scmp.lt.s32.totalorder %s2255_s0, %s2248_s11 }
  0x75   : > { %p2252_p1 = pneg %p2251_p6  ;;  %p2258_p4 = por %p2257_p9, %p2256_p7 }
  0x77   : > { %p2259_p5 = pnand %p2258_p4, %p2252_p1 }
  0x79   : > { %2262 = shalt.err (!%p2259_p5)
}
  0x7a   : > { %s3165_s12 = smov 4   ;;  %s3166_s30 = smov 64  }
  0x7b   : > { %2024 = dma.hbm_to_vmem [thread:$0]  (!%p2660_p12), %s2707_s13, 1024, %s2710_s5, %s2714_s23, %s3166_s30, %s3166_s30, %s3165_s12  }
  0x7c   : > { %s2480_s6 = smov [#allocation2]   ;;  %s2263_s11 = scalar_lea.hbm %s3099_s1, 256 }
  0x7d   : > { %s387_s16 = sshll.u32 %s2480_s6, 4  ;;  %p2264_p3 = scmp.ne.s32.totalorder %s3099_s1, %s2263_s11  ;;  %s388_s16 = int_to_ptr.vmem [resolvable:$true] %s387_s16 }
  0x7e   : > { %p3167_p8 = scmp.ne.s32.totalorder %s3157_s21, 0  ;;  %p2270_p13 = scmp.lt.u32.totalorder %s2263_s11, %s3099_s1 }
  0x80   : > { %p2266_p10 = pnand %p2264_p3, %p3167_p8 }
  0x82   : > { %p2267_p11 = pneg %p2266_p10 }
  0x84   : > { %p2272_p2 = pnand %p2270_p13, %p2267_p11 }
  0x86   : > { %2275 = shalt.err (!%p2272_p2)
}
  0x87   : > { %s2276_s5 = scalar_lea.vmem %s388_s16, 256  ;;  %p2284_p9 = scmp.lt.s32.totalorder %s388_s16, %s388_s16 }
  0x88   : > { %p2277_p6 = scmp.ne.s32.totalorder %s388_s16, %s2276_s5  ;;  %p2285_p4 = scmp.lt.s32.totalorder %s2276_s5, %s2276_s5 }
  0x8a   : > { %p2279_p1 = pnand %p2277_p6, %p3167_p8  ;;  %p2286_p5 = por %p2285_p4, %p2284_p9 }
  0x8c   : > { %p2280_p7 = pneg %p2279_p1 }
  0x8e   : > { %p2287_p12 = pnand %p2286_p5, %p2280_p7 }
  0x90   : > { %2290 = shalt.err (!%p2287_p12)
}
  0x91   : > { %s2481_s8 = smov 128   ;;  %s2482_s13 = smov 8  }
  0x92   : > { %p3168_p3 = scmp.ne.s32.totalorder %s3155_s14, 0  ;;  %s2483_s6 = smov [#allocation7]  }
  0x93   : > { %s417_s15 = sshll.u32 %s2483_s6, 4  ;;  %s2763_s0 = scalar_lea.hbm %s3105_s7, %s2701_s2  ;;  %s418_s15 = int_to_ptr.vmem [resolvable:$true] %s417_s15 }
  0x94   : > { %2008 = dma.hbm_to_vmem [thread:$0]  (!%p3168_p3), %s3099_s1, 256, %s388_s16, [#allocation3], %s2481_s8, %s2481_s8, %s2482_s13  }
  0x95   : > { %s2291_s24 = scalar_lea.hbm %s3102_s4, 16 }
  0x96   : > { %p2292_p12 = scmp.ne.s32.totalorder %s3102_s4, %s2291_s24  ;;  %p2298_p13 = scmp.lt.u32.totalorder %s2291_s24, %s3102_s4 }
  0x98   : > { %p2294_p10 = pnand %p2292_p12, %p3167_p8 }
  0x9a   : > { %p2295_p11 = pneg %p2294_p10 }
  0x9c   : > { %p2300_p2 = pnand %p2298_p13, %p2295_p11 }
  0x9e   : > { %2303 = shalt.err (!%p2300_p2)
}
  0x9f   : > { %s2304_s13 = scalar_lea.vmem %s418_s15, 16  ;;  %s2311_s9 = scalar_lea.vmem %s418_s15, 32 }
  0xa0   : > { %p2305_p6 = scmp.ne.s32.totalorder %s418_s15, %s2304_s13  ;;  %p2312_p9 = scmp.lt.s32.totalorder %s418_s15, %s418_s15 }
  0xa1   : > { %p2313_p4 = scmp.lt.s32.totalorder %s2311_s9, %s2304_s13 }
  0xa2   : > { %p2307_p1 = pnand %p2305_p6, %p3167_p8 }
  0xa3   : > { %p2314_p5 = por %p2313_p4, %p2312_p9 }
  0xa4   : > { %p2308_p7 = pneg %p2307_p1 }
  0xa6   : > { %p2315_p0 = pnand %p2314_p5, %p2308_p7 }
  0xa8   : > { %2318 = shalt.err (!%p2315_p0)
}
  0xa9   : > { %2014 = dma.hbm_to_vmem [thread:$0]  (!%p3168_p3), %s3102_s4, 16, %s418_s15, [#allocation6]  }
  0xaa   : > { %s460_s24 = scalar_lea.vmem [#allocation10], %s2666_s20  ;;  %s2790_s6 = scalar_lea.hbm %s3108_s10, %s2701_s2 }
  0xab   : > { %s467_s21 = sshll.u32 %s460_s24, 4  ;;  %s2319_s14 = scalar_lea.hbm %s2763_s0, 1024  ;;  %s2784_s21 = int_to_ptr.vmem [resolvable:$true] %s467_s21 }
  0xac   : > { %p2320_p0 = scmp.ne.s32.totalorder %s2763_s0, %s2319_s14  ;;  %p3169_p8 = scmp.ne.s32.totalorder %s3162_s18, 0 }
  0xad   : > { %s2324_s5 = scalar_lea.hbm %s3105_s7, 2048  ;;  %p2325_p3 = scmp.lt.u32.totalorder %s2763_s0, %s3105_s7 }
  0xae   : > { %p2322_p12 = pnand %p2320_p0, %p3169_p8  ;;  %p2326_p11 = scmp.lt.u32.totalorder %s2324_s5, %s2319_s14 }
  0xaf   : > { %p2328_p2 = scmp.lt.u32.totalorder %s2319_s14, %s2763_s0 }
  0xb0   : > { %p2323_p10 = pneg %p2322_p12  ;;  %p2327_p13 = por %p2326_p11, %p2325_p3 }
  0xb2   : > { %p2329_p6 = por %p2328_p2, %p2327_p13 }
  0xb4   : > { %p2330_p1 = pnand %p2329_p6, %p2323_p10 }
  0xb6   : > { %2333 = shalt.err (!%p2330_p1)
}
  0xb7   : > { %s2334_s2 = scalar_lea.vmem %s2784_s21, 1024  ;;  %s2484_s8 = smov [#allocation10]  }
  0xb8   : > { %p2335_p7 = scmp.ne.s32.totalorder %s2784_s21, %s2334_s2  ;;  %s2339_s13 = sshll.u32 %s2484_s8, 4  ;;  %s2340_s13 = int_to_ptr.vmem [resolvable:$false] %s2339_s13 }
  0xb9   : > { %s2341_s9 = scalar_lea.vmem %s2340_s13, 2048  ;;  %p2342_p5 = scmp.lt.s32.totalorder %s2784_s21, %s2340_s13 }
  0xba   : > { %p2337_p9 = pnand %p2335_p7, %p3169_p8  ;;  %p2343_p0 = scmp.lt.s32.totalorder %s2341_s9, %s2334_s2 }
  0xbc   : > { %p2338_p4 = pneg %p2337_p9  ;;  %p2344_p12 = por %p2343_p0, %p2342_p5 }
  0xbe   : > { %p2345_p3 = pnand %p2344_p12, %p2338_p4 }
  0xc0   : > { %2348 = shalt.err (!%p2345_p3)
}
  0xc1   : > { %p3170_p10 = scmp.ne.s32.totalorder %s3161_s17, 0  ;;  %s508_s22 = scalar_lea.vmem [#allocation13], %s2666_s20 }
  0xc2   : > { %s515_s28 = sshll.u32 %s508_s22, 4  ;;  %s2349_s24 = scalar_lea.hbm %s2790_s6, 1024  ;;  %s2818_s28 = int_to_ptr.vmem [resolvable:$true] %s515_s28 }
  0xc3   : > { %2021 = dma.hbm_to_vmem [thread:$0]  (!%p3170_p10), %s2763_s0, 1024, %s2784_s21, %s2670_s3, %s3166_s30, %s3166_s30, %s3165_s12  }
  0xc4   : > { %p2350_p11 = scmp.ne.s32.totalorder %s2790_s6, %s2349_s24  ;;  %s2354_s14 = scalar_lea.hbm %s3108_s10, 2048 }
  0xc5   : > { %p2355_p6 = scmp.lt.u32.totalorder %s2790_s6, %s3108_s10  ;;  %p2356_p1 = scmp.lt.u32.totalorder %s2354_s14, %s2349_s24 }
  0xc6   : > { %p2352_p13 = pnand %p2350_p11, %p3169_p8  ;;  %p2358_p9 = scmp.lt.u32.totalorder %s2349_s24, %s2790_s6 }
  0xc7   : > { %p2357_p7 = por %p2356_p1, %p2355_p6 }
  0xc8   : > { %p2353_p2 = pneg %p2352_p13 }
  0xc9   : > { %p2359_p4 = por %p2358_p9, %p2357_p7 }
  0xcb   : > { %p2360_p5 = pnand %p2359_p4, %p2353_p2 }
  0xcd   : > { %2363 = shalt.err (!%p2360_p5)
}
  0xce   : > { %s2364_s3 = scalar_lea.vmem %s2818_s28, 1024  ;;  %s2485_s20 = smov [#allocation13]  }
  0xcf   : > { %p2365_p0 = scmp.ne.s32.totalorder %s2818_s28, %s2364_s3  ;;  %s2369_s0 = sshll.u32 %s2485_s20, 4  ;;  %s2370_s0 = int_to_ptr.vmem [resolvable:$false] %s2369_s0 }
  0xd0   : > { %s2371_s21 = scalar_lea.vmem %s2370_s0, 2048  ;;  %p2372_p11 = scmp.lt.s32.totalorder %s2818_s28, %s2370_s0 }
  0xd1   : > { %p2367_p12 = pnand %p2365_p0, %p3169_p8  ;;  %p2373_p13 = scmp.lt.s32.totalorder %s2371_s21, %s2364_s3 }
  0xd3   : > { %p2368_p3 = pneg %p2367_p12  ;;  %p2374_p6 = por %p2373_p13, %p2372_p11 }
  0xd5   : > { %p2375_p1 = pnand %p2374_p6, %p2368_p3 }
  0xd7   : > { %2378 = shalt.err (!%p2375_p1)
}
  0xd8   : > { %2027 = dma.hbm_to_vmem [thread:$0]  (!%p3170_p10), %s2790_s6, 1024, %s2818_s28, %s2714_s23, %s3166_s30, %s3166_s30, %s3165_s12  }
  0xd9   : > { %p3171_p8 = scmp.ne.s32.totalorder %s3154_s29, 0 }
  0xda   : > { %p3172_p2 = scmp.eq.s32.totalorder (!%p3171_p8), %s2588_s27, 0 }
  0xdb   : > { %534 = sbr.rel (%p3171_p8) target bundleno = 2794 (0xaea), region = 68 }
  0xe2   : > { %2430 = dma.done.wait (%p3172_p2), [#allocation3], 256   ;;  %p3173_p7 = pmov %p3172_p2 }
  0xe3   : > { %p3174_p9 = pmov %p3172_p2 }
  0xe4   : > { %2432 = vsyncadd (%p3173_p7), [#allocation3], 4294967040 }
  0xe5   : > { %2434 = dma.done.wait (%p3174_p9), [#allocation6], 144   ;;  %p3175_p4 = pmov %p3172_p2 }
  0xe6   : > { %s3176_s17 = sld [smem:[#allocation20_spill]]  ;;  %s3177_s18 = sld [smem:[#allocation25_spill]] }
  0xe7   : > { %2436 = vsyncadd (%p3175_p4), [#allocation6], 4294967152  ;;  %s548_s5 = sand.u32 1, %s2588_s27  }
  0xe8   : > { %s549_s29 = scalar_lea.sflag [#allocation9], %s548_s5 }
  0xec   : > { %s550_s23 = sand.u32 1, %s3176_s17   ;;  %p3178_p10 = scmp.ne.s32.totalorder %s3177_s18, 0 }
  0xed   : > { %s1979_s12 = smul.u32 192, %s550_s23 }
  0xef   : > { %s2857_s30 = scalar_lea.vmem [#allocation8], %s1979_s12 }
  0xf0   : > { %2438 = dma.done.wait (%p3178_p10), %s549_s29, 4096  }
  0xf1   : > { %2440 = vsyncadd (%p3178_p10), %s549_s29, 4294963200  ;;  %s1771_s6 = sshll.u32 %s550_s23, 6  ;;  %s567_s15 = scalar_lea.sflag [#allocation12], %s548_s5 }
  0xf2   : > { %s2863_s16 = scalar_lea.vmem [#allocation10], %s1771_s6  ;;  %s2865_s2 = scalar_lea.vmem [#allocation11], %s1771_s6 }
  0xf3   : > { %2442 = dma.done.wait (%p3178_p10), %s567_s15, 2048  }
  0xf4   : > { %2444 = vsyncadd (%p3178_p10), %s567_s15, 4294965248  ;;  %s3179_s8 = sld [smem:[#allocation22_spill]]  ;;  %v665_v0 = vlaneseq  ;;  %s3180_s24 = sld [smem:[#allocation34_spill]]  ;;  %v2486_v2 = vmov 0.0  }
  0xf5   : > { %s3181_s19 = sld [smem:[#allocation32_spill]]  ;;  %s3182_s21 = sld [smem:[#allocation35_spill]] }
  0xf6   : > { %v666_v1 = vand.u32 127, %v665_v0  ;;  %s2895_s18 = scalar_lea.vmem [#allocation13], %s1771_s6 }
  0xf8   : > { %vm667_vm0 = vcmp.lt.s32.totalorder %v666_v1, 32 }
  0xf9   : > { %v2883_v3 = vsel %vm667_vm0, 1.0, %v2486_v2 }
  0xfa   : > { %p652_p5 = scmp.lt.s32.totalorder %s3179_s8, 1  ;;  %p1776_p0 = scmp.ne.s32.totalorder %s3179_s8, 0 }
  0xfb   : > { %v2102_v4 = vld [vmem:[#allocation5] sm:$0xff] (!%p1776_p0)   ;;  %v2487_v5 = vmov (!%p1776_p0), 0.0   ;;  %s3183_s12 = sld [smem:[#allocation28_spill]] (!%p1776_p0)  ;;  %vm2488_vm1 = vmmov (!%p1776_p0), 0   ;;  %vm692_vm2 = vcmask (!%p1776_p0), 130048  }
  0xfc   : > { %s2873_s13 = scalar_select %p652_p5, %s3179_s8, 1 }
  0xfd   : > { %673 = sbr.rel (%p1776_p0) target bundleno = 479 (0x1df), region = 100  ;;  %1879 = vmatprep.subr.bf16.mxu0 (!%p1776_p0), %v2487_v5  ;;  %1881 = vmatprep.mubr.msk.bf16.mxu0 (!%p1776_p0), %vm2488_vm1, %v2487_v5  ;;  %v1777_v9 = vld [vmem:[#allocation7] ss:$0 sm:$0xff] (!%p1776_p0) }
  0xfe   : > { %s1980_s9 = smul.u32 3, %s2873_s13  ;;  %s658_s25 = scalar_lea.vmem %s3180_s24, %s2873_s13  ;;  %1880 = vmatpush3.bf16.msra.mxu0 (!%p1776_p0), %v2102_v4 }
  0xff   : > { %s1774_s26 = sshll.u32 %s2873_s13, 3 }
 0x100   : > { %s2888_s3 = scalar_lea.vmem %s3181_s19, %s1980_s9  ;;  %s2893_s17 = scalar_lea.vmem %s3182_s21, %s1774_s26 }
 0x101   : > { %v674_v6 = vld [vmem:[%s3183_s12] sm:$0xff] (!%p1776_p0)  ;;  %v675_v7 = vld [vmem:[%s3183_s12 + $0x8] sm:$0xff] (!%p1776_p0)  ;;  %s3184_s9 = sld [smem:[#allocation29_spill]] (!%p1776_p0) }
 0x102   : > { %v678_v8 = vpack.c.bf16 (!%p1776_p0), %v675_v7, %v674_v6 }
 0x104   : > { %1882 = vmatmul.mubr.msk.bf16.vlgmr.msra.gmra.mrb[0].mxu0 %vm692_vm2, %v678_v8 }
 0x107   : > { %v737_v11 = vld [vmem:[%s3184_s9] sm:$0xff]  ;;  %v738_v15 = vld [vmem:[%s3184_s9 + $0x8] sm:$0xff] }
 0x1d7   : > { %v730_v10 = vpop.f32.mrb[0].mxu0 }
 0x1d8   : > { %v731_v12 = vadd.f32 %v1777_v9, %v730_v10  ;;  %v1883_v13 = vpop.f32.mrb[1].mxu0 }
 0x1d9   : > { %v733_v14 = vpop.f32.mrb[2].mxu0 }
 0x1da   : > { %v739_v16 = vadd.f32 %v737_v11, %v731_v12  ;;  %v734_v17 = vadd.f32 %v1777_v9, %v733_v14  ;;  %v1884_v18 = vpop.f32.mrb[3].mxu0 }
 0x1dc   : > { %741 = vst [vmem:[#allocation14] sm:$0xff] %v739_v16  ;;  %v740_v19 = vadd.f32 %v738_v15, %v734_v17 }
 0x1de   : > { %742 = vst [vmem:[#allocation14 + $0x8] sm:$0xff] %v740_v19 }
 0x1df PF: > { %v2103_v20 = vld [vmem:[%s2857_s30 + $0x4] ss:$12 sps:$4 sm:$0xff]   ;;  %1885 = vmatprep.subr.bf16.mxu1 %v2486_v2  ;;  %v2105_v21 = vld [vmem:[%s2857_s30] ss:$12 sps:$4 sm:$0xff]   ;;  %v2489_v22 = vmov 0   ;;  %vm2490_vm3 = vmmov 0  }
 0x1e0   : > { %956 = vmatprep.mubr.bf16.mxu0 %v2489_v22  ;;  %924 = vmatprep.subr.bf16.mxu0 %v2103_v20  ;;  %v2106_v23 = vld [vmem:[%s2857_s30 + $0x1c] ss:$12 sps:$4 sm:$0xff]   ;;  %v2108_v24 = vld [vmem:[%s2857_s30 + $0x18] ss:$12 sps:$4 sm:$0xff]   ;;  %v2109_v25 = vld [vmem:[%s2857_s30 + $0x34] ss:$12 sps:$4 sm:$0xff]  }
 0x1e1   : > { %925 = vmatpush1.bf16.msra.mxu0 %v2105_v21  ;;  %v2111_v26 = vld [vmem:[%s2857_s30 + $0x30] ss:$12 sps:$4 sm:$0xff]   ;;  %v2112_v27 = vld [vmem:[%s2857_s30 + $0x4c] ss:$12 sps:$4 sm:$0xff]   ;;  %v2114_v28 = vld [vmem:[%s2857_s30 + $0x48] ss:$12 sps:$4 sm:$0xff]   ;;  %1901 = vmatprep.mubr.msk.bf16.mxu1 %vm2490_vm3, %v2486_v2 }
 0x1e2   : > { %926 = vmatprep.subr.bf16.mxu0 %v2106_v23  ;;  %v2115_v29 = vld [vmem:[%s2857_s30 + $0x64] ss:$12 sps:$4 sm:$0xff]   ;;  %v2127_v30 = vld [vmem:[%s2857_s30 + $0x8] ss:$12 sps:$4 sm:$0xff]   ;;  %v2128_v31 = vld [vmem:[%s2857_s30 + $0x20] ss:$12 sps:$4 sm:$0xff]  }
 0x1e3   : > { %1886 = vmatpush3.bf16.msra.mxu1 %v2127_v30  ;;  %v2117_v32 = vld [vmem:[%s2857_s30 + $0x60] ss:$12 sps:$4 sm:$0xff]   ;;  %v2118_v33 = vld [vmem:[%s2857_s30 + $0x7c] ss:$12 sps:$4 sm:$0xff]   ;;  %v2129_v34 = vld [vmem:[%s2857_s30 + $0x38] ss:$12 sps:$4 sm:$0xff]  }
 0x1e4   : > { %1887 = vmatprep.subr.bf16.mxu1 %v2486_v2  ;;  %v2120_v35 = vld [vmem:[%s2857_s30 + $0x78] ss:$12 sps:$4 sm:$0xff]   ;;  %v2121_v36 = vld [vmem:[%s2857_s30 + $0x94] ss:$12 sps:$4 sm:$0xff]   ;;  %v2130_v37 = vld [vmem:[%s2857_s30 + $0x50] ss:$12 sps:$4 sm:$0xff]  }
 0x1e5   : > { %927 = vmatpush1.bf16.msra.mxu0 %v2108_v24  ;;  %v2123_v38 = vld [vmem:[%s2857_s30 + $0x90] ss:$12 sps:$4 sm:$0xff]   ;;  %v2124_v39 = vld [vmem:[%s2857_s30 + $0xac] ss:$12 sps:$4 sm:$0xff]   ;;  %v2131_v40 = vld [vmem:[%s2857_s30 + $0x68] ss:$12 sps:$4 sm:$0xff]  }
 0x1e6   : > { %928 = vmatprep.subr.bf16.mxu0 %v2109_v25  ;;  %v2126_v41 = vld [vmem:[%s2857_s30 + $0xa8] ss:$12 sps:$4 sm:$0xff]   ;;  %v2935_v42 = vld [vmem:[#allocation14] sm:$0xff]  ;;  %v2134_v47 = vld [vmem:[%s2857_s30 + $0xb0] ss:$12 sps:$4 sm:$0xff]   ;;  %v2957_v48 = vshrl.u32 %v665_v0, 7 }
 0x1e7   : > { %1888 = vmatpush3.bf16.msra.mxu1 %v2128_v31  ;;  %v2937_v43 = vld [vmem:[#allocation14 + $0x8] sm:$0xff]  ;;  %v2133_v46 = vld [vmem:[%s2857_s30 + $0x98] ss:$12 sps:$4 sm:$0xff]   ;;  %vm1053_vm4 = vcmask 130048   ;;  %s2491_s13 = smov [#allocation14]   ;;  %p2035_p12 = scmp.eq.s32.totalorder %s2588_s27, 1 }
 0x1e8   : > { %1889 = vmatprep.subr.bf16.mxu1 %v2486_v2  ;;  %v2132_v44 = vld [vmem:[%s2857_s30 + $0x80] ss:$12 sps:$4 sm:$0xff]   ;;  %v778_v45 = vpack.c.bf16 %v2937_v43, %v2935_v42  ;;  %v783_v49 = vsub.s32 0, %v2957_v48  ;;  %v779_v50 = vld [vmem:[%s2888_s3] sm:$0x7]  ;;  %v787_v51 = vsub.s32 1, %v2957_v48 }
 0x1e9   : > { %929 = vmatpush1.bf16.msra.mxu0 %v2111_v26  ;;  %v791_v0 = vsub.s32 2, %v2957_v48  ;;  %v1010_v11 = vld [vmem:[#allocation2] sm:$0xff]  ;;  %v1011_v13 = vld [vmem:[#allocation2 + $0x8] sm:$0xff]  ;;  %s1544_s24 = sshll.u32 %s2491_s13, 4  ;;  %s1545_s24 = int_to_ptr.vmem [resolvable:$true] %s1544_s24 }
 0x1ea   : > { %930 = vmatprep.subr.bf16.mxu0 %v2112_v27  ;;  %v784_v52 = vrot.slane %v779_v50, %v783_v49  ;;  %v788_v54 = vrot.slane %v779_v50, %v787_v51  ;;  %v2135_v31 = vld [vmem:[%s2863_s16] sm:$0xff]   ;;  %p2386_p6 = scmp.lt.s32.totalorder %s1545_s24, %s1545_s24 }
 0x1eb   : > { %1890 = vmatpush3.bf16.msra.mxu1 %v2129_v34  ;;  %v792_v1 = vrot.slane %v779_v50, %v791_v0  ;;  %v2138_v34 = vld [vmem:[%s2863_s16 + $0x18] sm:$0xff]  }
 0x1ec   : > { %1891 = vmatprep.subr.bf16.mxu1 %v2486_v2 }
 0x1ed   : > { %931 = vmatpush1.bf16.msra.mxu0 %v2114_v28 }
 0x1ee   : > { %932 = vmatprep.subr.bf16.mxu0 %v2115_v29 }
 0x1ef   : > { %1892 = vmatpush3.bf16.msra.mxu1 %v2130_v37  ;;  %v2141_v37 = vld [vmem:[%s2863_s16 + $0x30] sm:$0xff]  }
 0x1f0   : > { %1893 = vmatprep.subr.bf16.mxu1 %v2486_v2 }
 0x1f1   : > { %933 = vmatpush1.bf16.msra.mxu0 %v2117_v32  ;;  %v2136_v32 = vld [vmem:[%s2863_s16 + $0x8] sm:$0xff]  }
 0x1f2   : > { %934 = vmatprep.subr.bf16.mxu0 %v2118_v33  ;;  %v2137_v33 = vld [vmem:[%s2863_s16 + $0x10] sm:$0xff]  }
 0x1f3   : > { %1894 = vmatpush3.bf16.msra.mxu1 %v2131_v40 }
 0x1f4   : > { %1895 = vmatprep.subr.bf16.mxu1 %v2486_v2 }
 0x1f5   : > { %935 = vmatpush1.bf16.msra.mxu0 %v2120_v35  ;;  %v2139_v35 = vld [vmem:[%s2863_s16 + $0x20] sm:$0xff]  }
 0x1f6   : > { %936 = vmatprep.subr.bf16.mxu0 %v2121_v36  ;;  %v2140_v36 = vld [vmem:[%s2863_s16 + $0x28] sm:$0xff]  }
 0x1f7   : > { %1896 = vmatpush3.bf16.msra.mxu1 %v2132_v44 }
 0x1f8   : > { %1897 = vmatprep.subr.bf16.mxu1 %v2486_v2 }
 0x1f9   : > { %937 = vmatpush1.bf16.msra.mxu0 %v2123_v38 }
 0x1fa   : > { %938 = vmatprep.subr.bf16.mxu0 %v2124_v39 }
 0x1fb   : > { %1898 = vmatpush3.bf16.msra.mxu1 %v2133_v46 }
 0x1fc   : > { %1899 = vmatprep.subr.bf16.mxu1 %v2486_v2 }
 0x1fd   : > { %939 = vmatpush1.bf16.msra.mxu0 %v2126_v41 }
 0x1fe   : > { %1917 = vmatprep.subr.bf16.mxu0 %v2486_v2 }
 0x1ff   : > { %1900 = vmatpush3.bf16.msra.mxu1 %v2134_v47  ;;  %v2142_v47 = vld [vmem:[%s2863_s16 + $0x38] sm:$0xff]  }
 0x200   : > { %957 = vmatmul.mubr.bf16.vlgmr.msra.gmra.mrb[0].mxu0 %v778_v45  ;;  %1905 = vmatprep.subr.bf16.mxu1 %v2486_v2 }
 0x201   : > { %1933 = vmatprep.mubr.msk.bf16.mxu0 %vm2490_vm3, %v2486_v2  ;;  %1918 = vmatpush3.bf16.msra.mxu0 %v2135_v31 }
 0x202   : > { %1902 = vmatmul.mubr.bf16.vlgmr.msra.gmra.mrb[0].mxu1 %v778_v45  ;;  %1919 = vmatprep.subr.bf16.mxu0 %v2486_v2 }
 0x203   : > { %1907 = vmatprep.mubr.msk.bf16.mxu1 %vm2490_vm3, %v2486_v2 }
 0x205   : > { %1920 = vmatpush3.bf16.msra.mxu0 %v2136_v32 }
 0x206   : > { %1921 = vmatprep.subr.bf16.mxu0 %v2486_v2 }
 0x209   : > { %1922 = vmatpush3.bf16.msra.mxu0 %v2137_v33 }
 0x20a   : > { %1923 = vmatprep.subr.bf16.mxu0 %v2486_v2 }
 0x20d   : > { %1924 = vmatpush3.bf16.msra.mxu0 %v2138_v34 }
 0x20e   : > { %1925 = vmatprep.subr.bf16.mxu0 %v2486_v2 }
 0x211   : > { %1926 = vmatpush3.bf16.msra.mxu0 %v2139_v35 }
 0x212   : > { %1927 = vmatprep.subr.bf16.mxu0 %v2486_v2 }
 0x215   : > { %1928 = vmatpush3.bf16.msra.mxu0 %v2140_v36 }
 0x216   : > { %1929 = vmatprep.subr.bf16.mxu0 %v2486_v2 }
 0x219   : > { %1930 = vmatpush3.bf16.msra.mxu0 %v2141_v37 }
 0x21a   : > { %1931 = vmatprep.subr.bf16.mxu0 %v2486_v2 }
 0x21d   : > { %1932 = vmatpush3.bf16.msra.mxu0 %v2142_v47 }
 0x21e   : > { %1957 = vmatprep.subr.bf16.mxu0 %v2486_v2 }
 0x2d3   : > { %v958_v53 = vpop.f32.mrb[0].mxu0 }
 0x2d4   : > { %v960_v55 = vpop.f32.mrb[1].mxu0  ;;  %v959_v57 = vadd.f32 %v958_v53, %v784_v52 }
 0x2d5   : > { %v962_v56 = vpop.f32.mrb[2].mxu0  ;;  %v961_v60 = vadd.f32 %v960_v55, %v788_v54  ;;  %v1001_v4 = vpop.f32.mrb[0].mxu1 }
 0x2d6   : > { %v963_v58 = vadd.f32 %v962_v56, %v784_v52  ;;  %v964_v59 = vpop.f32.mrb[3].mxu0  ;;  %v1002_v5 = vadd.f32 %v1001_v4, %v792_v1  ;;  %v1903_v6 = vpop.f32.mrb[1].mxu1  ;;  %v2999_v56 = vld [vmem:[%s2893_s17] sm:$0x3f] }
 0x2d7   : > { %v965_v61 = vadd.f32 %v964_v59, %v788_v54  ;;  %v1004_v7 = vpop.f32.mrb[2].mxu1  ;;  %v2144_v6 = vld [vmem:[%s2865_s2 + $0x8] sm:$0xff]   ;;  %v1261_v32 = vrot.slane %v2999_v56, %v787_v51  ;;  %v1267_v36 = vrot.slane %v2999_v56, %v791_v0  ;;  %v2158_v51 = vld [vmem:[%s2895_s18 + $0x38] sm:$0xff]  }
 0x2d8   : > { %v1008_v62 = vpack.c.bf16 %v963_v58, %v959_v57  ;;  %v1005_v8 = vadd.f32 %v1004_v7, %v792_v1  ;;  %v1904_v9 = vpop.f32.mrb[3].mxu1  ;;  %v1142_v57 = vrot.slane %v2999_v56, %v783_v49 }
 0x2d9   : > { %v1009_v63 = vpack.c.bf16 %v965_v61, %v961_v60 }
 0x2da   : > { %v1077_v10 = vpack.c.bf16 %v1005_v8, %v1002_v5  ;;  %v2143_v5 = vld [vmem:[%s2865_s2] sm:$0xff]  }
 0x2db   : > { %1906 = vmatpush3.bf16.xpose.msra.mxu1 %v1009_v63 }
 0x2dc   : > { %1911 = vmatprep.subr.bf16.mxu1 %v2486_v2 }
 0x2e2   : > { %1908 = vmatmul.mubr.bf16.vlgmr.msra.gmra.mrb[4].mxu1 %v1008_v62 }
 0x2e3   : > { %1913 = vmatprep.mubr.msk.bf16.mxu1 %vm2490_vm3, %v2486_v2  ;;  %1912 = vmatpush3.bf16.msra.mxu1 %v1077_v10 }
 0x2e4   : > { %1937 = vmatprep.subr.bf16.mxu1 %v2486_v2 }
 0x3b5   : > { %v1046_v12 = vpop.f32.mrb[4].mxu1 }
 0x3b6   : > { %v1047_v14 = vadd.f32 %v1046_v12, %v1010_v11  ;;  %v1909_v15 = vpop.f32.mrb[5].mxu1 }
 0x3b7   : > { %v1049_v16 = vpop.f32.mrb[6].mxu1  ;;  %v2146_v15 = vld [vmem:[%s2865_s2 + $0x18] sm:$0xff]  }
 0x3b8   : > { %v1050_v17 = vadd.f32 %v1049_v16, %v1011_v13  ;;  %v1910_v18 = vpop.f32.mrb[7].mxu1  ;;  %v1054_v19 = vsel %vm1053_vm4, %v1047_v14, -inf  ;;  %v2147_v16 = vld [vmem:[%s2865_s2 + $0x20] sm:$0xff]  }
 0x3b9   : > { %1055 = vmax.xlane.f32.xlu0 %v1054_v19  ;;  %v2149_v18 = vld [vmem:[%s2865_s2 + $0x30] sm:$0xff]   ;;  %v2150_v19 = vld [vmem:[%s2865_s2 + $0x38] sm:$0xff]  }
 0x3ba   : > { %v1057_v20 = vsel %vm1053_vm4, %v1050_v17, -inf }
 0x3bd   : > { %1058 = vmax.xlane.f32.xlu0 %v1057_v20  ;;  %v2151_v20 = vld [vmem:[%s2895_s18] sm:$0xff]  }
 0x446   : > { %v1056_v21 = vpop.xlane.xlu0 %1055 }
 0x447   : > { %v1060_v22 = vsub.f32 %v1047_v14, %v1056_v21  ;;  %v2145_v14 = vld [vmem:[%s2865_s2 + $0x10] sm:$0xff]   ;;  %v2152_v21 = vld [vmem:[%s2895_s18 + $0x8] sm:$0xff]  }
 0x449   : > { %v1062_v23 = vmul.f32 1.442695, %v1060_v22  ;;  %v2153_v22 = vld [vmem:[%s2895_s18 + $0x10] sm:$0xff]  }
 0x44a   : > { %v1059_v24 = vpop.xlane.xlu0 %1058 }
 0x44b   : > { %2159 = vpow2.f32 %v1062_v23  ;;  %v1061_v25 = vsub.f32 %v1050_v17, %v1059_v24  ;;  %v2148_v17 = vld [vmem:[%s2865_s2 + $0x28] sm:$0xff]   ;;  %v2154_v23 = vld [vmem:[%s2895_s18 + $0x18] sm:$0xff]   ;;  %v2155_v24 = vld [vmem:[%s2895_s18 + $0x20] sm:$0xff]  }
 0x44d   : > { %v1064_v26 = vmul.f32 1.442695, %v1061_v25  ;;  %v2156_v25 = vld [vmem:[%s2895_s18 + $0x28] sm:$0xff]  }
 0x44f   : > { %2161 = vpow2.f32 %v1064_v26 }
 0x455   : > { %v2160_v27 = vpop.eup %2159 }
 0x456   : > { %v1066_v28 = vsel %vm1053_vm4, %v2160_v27, 0.0 }
 0x457   : > { %1067 = vadd.xlane.f32.xlu1 %v1066_v28 }
 0x459   : > { %v2162_v29 = vpop.eup %2161 }
 0x45a   : > { %v1069_v30 = vsel %vm1053_vm4, %v2162_v29, 0.0 }
 0x45b   : > { %1070 = vadd.xlane.f32.xlu1 %v1069_v30 }
 0x4e4   : > { %v1068_v38 = vpop.xlane.xlu1 %1067 }
 0x4e5   : > { %2163 = vrcp.f32 %v1068_v38 }
 0x4e8   : > { %v1071_v39 = vpop.xlane.xlu1 %1070 }
 0x4e9   : > { %2165 = vrcp.f32 %v1071_v39 }
 0x4ef   : > { %v2164_v40 = vpop.eup %2163 }
 0x4f0   : > { %v1073_v44 = vmul.f32 %v2164_v40, %v2160_v27 }
 0x4f3   : > { %v2166_v41 = vpop.eup %2165 }
 0x4f4   : > { %v1075_v45 = vmul.f32 %v2166_v41, %v2162_v29 }
 0x4f6   : > { %v1076_v46 = vpack.c.bf16 %v1075_v45, %v1073_v44  ;;  %v2157_v45 = vld [vmem:[%s2895_s18 + $0x30] sm:$0xff]  }
 0x4f8   : > { %1914 = vmatmul.mubr.msk.bf16.vlgmr.msra.gmra.mrb[8].mxu1 %vm1053_vm4, %v1076_v46  ;;  %v1813_v46 = vld [vmem:[%s658_s25] ss:$0 sm:$0xff]  ;;  %s2379_s25 = scalar_lea.vmem %s1545_s24, 256 }
 0x4f9   : > { %1953 = vmatprep.mubr.msk.bf16.mxu1 %vm2490_vm3, %v2486_v2  ;;  %1938 = vmatpush3.bf16.msra.mxu1 %v2143_v5  ;;  %p2380_p3 = scmp.ne.s32.totalorder %s1545_s24, %s2379_s25  ;;  %p2387_p1 = scmp.lt.s32.totalorder %s2379_s25, %s2379_s25 }
 0x4fa   : > { %1939 = vmatprep.subr.bf16.mxu1 %v2486_v2 }
 0x4fb   : > { %p2381_p11 = pnand %p2380_p3, %p2035_p12  ;;  %p2388_p8 = por %p2387_p1, %p2386_p6 }
 0x4fd   : > { %1940 = vmatpush3.bf16.msra.mxu1 %v2144_v6  ;;  %p2382_p13 = pneg %p2381_p11 }
 0x4fe   : > { %1941 = vmatprep.subr.bf16.mxu1 %v2486_v2 }
 0x4ff   : > { %p2389_p2 = pnand %p2388_p8, %p2382_p13 }
 0x501   : > { %1942 = vmatpush3.bf16.msra.mxu1 %v2145_v14 }
 0x502   : > { %1943 = vmatprep.subr.bf16.mxu1 %v2486_v2 }
 0x505   : > { %1944 = vmatpush3.bf16.msra.mxu1 %v2146_v15 }
 0x506   : > { %1945 = vmatprep.subr.bf16.mxu1 %v2486_v2 }
 0x509   : > { %1946 = vmatpush3.bf16.msra.mxu1 %v2147_v16 }
 0x50a   : > { %1947 = vmatprep.subr.bf16.mxu1 %v2486_v2 }
 0x50d   : > { %1948 = vmatpush3.bf16.msra.mxu1 %v2148_v17 }
 0x50e   : > { %1949 = vmatprep.subr.bf16.mxu1 %v2486_v2 }
 0x511   : > { %1950 = vmatpush3.bf16.msra.mxu1 %v2149_v18 }
 0x512   : > { %1951 = vmatprep.subr.bf16.mxu1 %v2486_v2 }
 0x515   : > { %1952 = vmatpush3.bf16.msra.mxu1 %v2150_v19 }
 0x5cb   : > { %v1115_v50 = vpop.f32.mrb[8].mxu1 }
 0x5cc   : > { %v1915_v52 = vpop.f32.mrb[9].mxu1 }
 0x5cd   : > { %v1118_v53 = vpop.f32.mrb[10].mxu1 }
 0x5ce   : > { %v1138_v54 = vpack.c.bf16 %v1118_v53, %v1115_v50  ;;  %v1916_v55 = vpop.f32.mrb[11].mxu1 }
 0x5d0   : > { %1934 = vmatmul.mubr.bf16.vlgmr.msra.gmra.mrb[4].mxu0 %v1138_v54 }
 0x5d1   : > { %1973 = vmatprep.mubr.msk.bf16.mxu0 %vm2490_vm3, %v2486_v2  ;;  %1958 = vmatpush3.bf16.msra.mxu0 %v2151_v20  ;;  %v1523_v20 = vsub.s32 4, %v2957_v48 }
 0x5d2   : > { %1959 = vmatprep.subr.bf16.mxu0 %v2486_v2 }
 0x5d5   : > { %1960 = vmatpush3.bf16.msra.mxu0 %v2152_v21  ;;  %v1529_v21 = vsub.s32 5, %v2957_v48 }
 0x5d6   : > { %1961 = vmatprep.subr.bf16.mxu0 %v2486_v2 }
 0x5d9   : > { %1962 = vmatpush3.bf16.msra.mxu0 %v2153_v22  ;;  %v1524_v22 = vrot.slane %v2999_v56, %v1523_v20 }
 0x5da   : > { %1963 = vmatprep.subr.bf16.mxu0 %v2486_v2 }
 0x5dd   : > { %1964 = vmatpush3.bf16.msra.mxu0 %v2154_v23 }
 0x5de   : > { %1965 = vmatprep.subr.bf16.mxu0 %v2486_v2 }
 0x5e1   : > { %1966 = vmatpush3.bf16.msra.mxu0 %v2155_v24  ;;  %v1530_v24 = vrot.slane %v2999_v56, %v1529_v21 }
 0x5e2   : > { %1967 = vmatprep.subr.bf16.mxu0 %v2486_v2 }
 0x5e5   : > { %1968 = vmatpush3.bf16.msra.mxu0 %v2156_v25 }
 0x5e6   : > { %1969 = vmatprep.subr.bf16.mxu0 %v2486_v2 }
 0x5e9   : > { %1970 = vmatpush3.bf16.msra.mxu0 %v2157_v45 }
 0x5ea   : > { %1971 = vmatprep.subr.bf16.mxu0 %v2486_v2 }
 0x5ed   : > { %1972 = vmatpush3.bf16.msra.mxu0 %v2158_v51 }
 0x6a3   : > { %v1225_v58 = vpop.f32.mrb[4].mxu0 }
 0x6a4   : > { %v1226_v59 = vadd.f32 %v1225_v58, %v1142_v57  ;;  %v1935_v60 = vpop.f32.mrb[5].mxu0 }
 0x6a5   : > { %v1228_v61 = vpop.f32.mrb[6].mxu0 }
 0x6a6   : > { %v1229_v62 = vadd.f32 %v1228_v61, %v1142_v57  ;;  %v1936_v63 = vpop.f32.mrb[7].mxu0  ;;  %v1232_v1 = vadd.f32 %v1226_v59, %v2935_v42  ;;  %v1404_v59 = vsub.s32 3, %v2957_v48 }
 0x6a8   : > { %1234 = vadd.xlane.f32.xlu0 %v1232_v1  ;;  %v1233_v4 = vadd.f32 %v1229_v62, %v2937_v43  ;;  %v1405_v2 = vrot.slane %v2999_v56, %v1404_v59 }
 0x6aa   : > { %1236 = vadd.xlane.f32.xlu1 %v1233_v4 }
 0x735   : > { %v1235_v49 = vpop.xlane.xlu0 %1234 }
 0x736   : > { %v1238_v7 = vmul.f32 0.03125, %v1235_v49 }
 0x737   : > { %v1237_v8 = vpop.xlane.xlu1 %1236 }
 0x738   : > { %v1240_v9 = vsub.f32 %v1232_v1, %v1238_v7  ;;  %v1239_v42 = vmul.f32 0.03125, %v1237_v8 }
 0x73a   : > { %v1242_v10 = vmul.f32 %v2883_v3, %v1240_v9  ;;  %v1241_v43 = vsub.f32 %v1233_v4, %v1239_v42 }
 0x73c   : > { %v1243_v11 = vmul.f32 %v2883_v3, %v1241_v43  ;;  %v1244_v12 = vmul.f32 %v1242_v10, %v1242_v10 }
 0x73e   : > { %1246 = vadd.xlane.f32.xlu0 %v1244_v12  ;;  %v1245_v13 = vmul.f32 %v1243_v11, %v1243_v11 }
 0x740   : > { %1248 = vadd.xlane.f32.xlu1 %v1245_v13 }
 0x7cb   : > { %v1247_v26 = vpop.xlane.xlu0 %1246 }
 0x7cc   : > { %v1250_v27 = vmul.f32 0.03125, %v1247_v26 }
 0x7cd   : > { %v1249_v28 = vpop.xlane.xlu1 %1248 }
 0x7ce   : > { %v1252_v29 = vadd.f32 1e-05, %v1250_v27  ;;  %v1251_v30 = vmul.f32 0.03125, %v1249_v28 }
 0x7d0   : > { %2167 = vrsqrt.f32 %v1252_v29  ;;  %v1253_v31 = vadd.f32 1e-05, %v1251_v30 }
 0x7d2   : > { %2169 = vrsqrt.f32 %v1253_v31 }
 0x7da   : > { %v2168_v33 = vpop.eup %2167 }
 0x7db   : > { %v1256_v34 = vmul.f32 %v2168_v33, %v1242_v10 }
 0x7dc   : > { %v2170_v35 = vpop.eup %2169 }
 0x7dd   : > { %v1257_v37 = vmul.f32 %v2170_v35, %v1243_v11  ;;  %v1262_v38 = vmul.f32 %v1261_v32, %v1256_v34 }
 0x7df   : > { %v1263_v39 = vmul.f32 %v1261_v32, %v1257_v37  ;;  %v1268_v40 = vadd.f32 %v1267_v36, %v1262_v38 }
 0x7e1   : > { %v1269_v41 = vadd.f32 %v1267_v36, %v1263_v39 }
 0x7e3   : > { %v1286_v44 = vpack.c.bf16 %v1269_v41, %v1268_v40 }
 0x7e5   : > { %1954 = vmatmul.mubr.bf16.vlgmr.msra.gmra.mrb[12].mxu1 %v1286_v44 }
 0x8b8   : > { %v1376_v47 = vpop.f32.mrb[12].mxu1 }
 0x8b9   : > { %v1377_v0 = vadd.f32 %v1813_v46, %v1376_v47  ;;  %v1955_v50 = vpop.f32.mrb[13].mxu1 }
 0x8ba   : > { %v1379_v52 = vpop.f32.mrb[14].mxu1 }
 0x8bb   : > { %v1380_v53 = vadd.f32 %v1813_v46, %v1379_v52  ;;  %v1956_v54 = vpop.f32.mrb[15].mxu1  ;;  %v1383_v55 = vmax.f32 %v1377_v0, 0.0 }
 0x8bd   : > { %v1384_v57 = vmax.f32 %v1380_v53, 0.0 }
 0x8bf   : > { %v1401_v58 = vpack.c.bf16 %v1384_v57, %v1383_v55 }
 0x8c1   : > { %1974 = vmatmul.mubr.bf16.vlgmr.msra.gmra.mrb[8].mxu0 %v1401_v58 }
 0x994   : > { %v1488_v60 = vpop.f32.mrb[8].mxu0 }
 0x995   : > { %v1489_v61 = vadd.f32 %v1488_v60, %v1405_v2  ;;  %v1975_v62 = vpop.f32.mrb[9].mxu0 }
 0x996   : > { %v1491_v63 = vpop.f32.mrb[10].mxu0 }
 0x997   : > { %v1492_v1 = vadd.f32 %v1491_v63, %v1405_v2  ;;  %v1976_v4 = vpop.f32.mrb[11].mxu0  ;;  %v1495_v5 = vadd.f32 %v1489_v61, %v1268_v40 }
 0x999   : > { %1497 = vadd.xlane.f32.xlu0 %v1495_v5  ;;  %v1496_v6 = vadd.f32 %v1492_v1, %v1269_v41 }
 0x99b   : > { %1499 = vadd.xlane.f32.xlu1 %v1496_v6 }
 0xa26   : > { %v1498_v49 = vpop.xlane.xlu0 %1497 }
 0xa27   : > { %v1501_v7 = vmul.f32 0.03125, %v1498_v49 }
 0xa28   : > { %v1500_v8 = vpop.xlane.xlu1 %1499 }
 0xa29   : > { %v1503_v9 = vsub.f32 %v1495_v5, %v1501_v7  ;;  %v1502_v42 = vmul.f32 0.03125, %v1500_v8 }
 0xa2b   : > { %v1505_v10 = vmul.f32 %v2883_v3, %v1503_v9  ;;  %v1504_v43 = vsub.f32 %v1496_v6, %v1502_v42 }
 0xa2d   : > { %v1506_v11 = vmul.f32 %v2883_v3, %v1504_v43  ;;  %v1507_v12 = vmul.f32 %v1505_v10, %v1505_v10 }
 0xa2f   : > { %1509 = vadd.xlane.f32.xlu0 %v1507_v12  ;;  %v1508_v13 = vmul.f32 %v1506_v11, %v1506_v11 }
 0xa31   : > { %1511 = vadd.xlane.f32.xlu1 %v1508_v13 }
 0xabc   : > { %v1510_v14 = vpop.xlane.xlu0 %1509 }
 0xabd   : > { %v1513_v15 = vmul.f32 0.03125, %v1510_v14 }
 0xabe   : > { %v1512_v16 = vpop.xlane.xlu1 %1511 }
 0xabf   : > { %v1515_v17 = vadd.f32 1e-05, %v1513_v15  ;;  %v1514_v18 = vmul.f32 0.03125, %v1512_v16 }
 0xac1   : > { %2171 = vrsqrt.f32 %v1515_v17  ;;  %v1516_v19 = vadd.f32 1e-05, %v1514_v18 }
 0xac3   : > { %2173 = vrsqrt.f32 %v1516_v19 }
 0xacb   : > { %v2172_v3 = vpop.eup %2171 }
 0xacc   : > { %v1519_v23 = vmul.f32 %v2172_v3, %v1505_v10 }
 0xacd   : > { %v2174_v25 = vpop.eup %2173 }
 0xace   : > { %v1520_v26 = vmul.f32 %v2174_v25, %v1506_v11  ;;  %v1525_v27 = vmul.f32 %v1524_v22, %v1519_v23 }
 0xad0   : > { %v1526_v28 = vmul.f32 %v1524_v22, %v1520_v26  ;;  %v1531_v29 = vadd.f32 %v1530_v24, %v1525_v27 }
 0xad2   : > { %v1532_v30 = vadd.f32 %v1530_v24, %v1526_v28  ;;  %1533 = vst [vmem:[#allocation14] sm:$0xff] %v1531_v29 }
 0xad4   : > { %1534 = vst [vmem:[#allocation14 + $0x8] sm:$0xff] %v1532_v30 }
 0xad5   : > { %2392 = shalt.err (!%p2389_p2)
}
 0xad6   : > { %s3186_s11 = sld [smem:[#allocation36_spill]] }
 0xadc   : > { %s2393_s19 = scalar_lea.hbm %s3186_s11, 256 }
 0xadd   : > { %p2394_p7 = scmp.ne.s32.totalorder %s3186_s11, %s2393_s19  ;;  %p2399_p10 = scmp.lt.u32.totalorder %s2393_s19, %s3186_s11 }
 0xadf   : > { %p2395_p9 = pnand %p2394_p7, %p2035_p12 }
 0xae1   : > { %p2396_p4 = pneg %p2395_p9 }
 0xae3   : > { %p2401_p5 = pnand %p2399_p10, %p2396_p4 }
 0xae5   : > { %2404 = shalt.err (!%p2401_p5)
}
 0xae6   : > { %s2492_s17 = smov 128   ;;  %s2493_s18 = smov 8  }
 0xae7   : > { %2002 = dma.vmem_to_hbm [thread:$0]  (%p2035_p12), %s1545_s24, 256, %s3186_s11, [#allocation4], %s2492_s17, %s2492_s17, %s2493_s18  }
 0xae8   : > { %2446 = dma.done.wait (%p2035_p12), [#allocation4], 256  }
 0xae9   : > { %2448 = vsyncadd (%p2035_p12), [#allocation4], 4294967040 }
 0xaea PF: > { %s3187_s29 = sld [smem:[#allocation24_spill]]  ;;  %s3188_s21 = sld [smem:[#allocation20_spill]] }
 0xaeb   : > { %s3189_s22 = sld [smem:[#allocation21_spill]]  ;;  %s3190_s23 = sld [smem:[#allocation27_spill]] }
 0xaec   : > { %s3191_s24 = sld [smem:[#allocation23_spill]]  ;;  %s3192_s25 = sld [smem:[#allocation26_spill]] }
 0xaf0   : > { %s31_s26 = sadd.s32 1, %s3187_s29  }
 0xaf1   : > { %p28_p0 = scmp.ge.s32.totalorder %s31_s26, 4  }
 0xaf3   :  { %30 = sbr.rel (!%p28_p0) target bundleno = 19 (0x13), region = 170 }
 0xafa   :  { %1560 = vsyncpa [#allocation3], 1 }
 0xafb   :  { %1562 = vsyncpa [#allocation3 + $0x1], 1 }
 0xafc   :  { %1563 = vsyncpa [#allocation6], 1 }
 0xafd   :  { %1564 = vsyncpa [#allocation9], 1 }
 0xafe   :  { %1566 = vsyncpa [#allocation9 + $0x1], 1 }
 0xaff   :  { %1567 = vsyncpa [#allocation12], 1 }
 0xb00   :  { %1569 = vsyncpa [#allocation12 + $0x1], 1 }
 0xb01   :  { %1570 = vsyncpa [#allocation4], 1 }
 0xb02   :  { %1572 = vsyncpa [#allocation4 + $0x1], 1 }

</bundles_post_ra>
